<compile_context>
chip_gen: v6e
topology: v6e:2x2x1
jax: 0.10.0
libtpu: 0.0.40
codegen_flags: <defaults>
</compile_context>

<pallas_src>
import functools

import jax
import jax.numpy as jnp
from jax.experimental import pallas as pl
from jax.experimental.pallas import tpu as pltpu

BN_EPS = 1e-5
ACT_DTYPE = jnp.bfloat16   # activation / GEMM-input dtype (epilogue stays f32)
LANE = 128
VMEM_LIMIT = 32 * 1024 * 1024   # fits v5e/v6e scoped VMEM and v7x (64 MiB phys)


def _round_up(x, m):
    return (x + m - 1) // m * m


# ----------------------------------------------------------------------------
# Pallas kernels
# ----------------------------------------------------------------------------
def _gemm_kernel(a_ref, b_ref, scale_ref, bias_ref, o_ref, acc_ref, *, relu):
    """Tiled GEMM + folded-BN epilogue (no residual)."""
    @pl.when(pl.program_id(2) == 0)
    def _():
        acc_ref[...] = jnp.zeros_like(acc_ref)

    acc_ref[...] += jnp.dot(a_ref[...], b_ref[...],
                            preferred_element_type=jnp.float32)

    @pl.when(pl.program_id(2) == pl.num_programs(2) - 1)
    def _():
        out = acc_ref[...] * scale_ref[...] + bias_ref[...]
        if relu:
            out = jnp.maximum(out, 0.0)
        o_ref[...] = out.astype(o_ref.dtype)


def _gemm_res_kernel(a_ref, b_ref, scale_ref, bias_ref, res_ref, o_ref,
                     acc_ref, *, relu):
    """Tiled GEMM + folded-BN + residual add + ReLU epilogue."""
    @pl.when(pl.program_id(2) == 0)
    def _():
        acc_ref[...] = jnp.zeros_like(acc_ref)

    acc_ref[...] += jnp.dot(a_ref[...], b_ref[...],
                            preferred_element_type=jnp.float32)

    @pl.when(pl.program_id(2) == pl.num_programs(2) - 1)
    def _():
        out = acc_ref[...] * scale_ref[...] + bias_ref[...]
        out = out + res_ref[...].astype(jnp.float32)
        if relu:
            out = jnp.maximum(out, 0.0)
        o_ref[...] = out.astype(o_ref.dtype)


def fused_matmul(a, b, scale, bias, residual=None, relu=False):
    """(a @ b) * scale + bias (+residual) (ReLU) as a tiled MXU GEMM.

    Inputs are cast to bf16 (f32 accumulation + f32 epilogue), N is padded to
    a lane-dense multiple of 128 so every output store is an unmasked full
    vreg, K is padded to a 128-aligned contraction, and the grid is
    (M/tm, N/tn, K/tk) with a VMEM f32 accumulator.
    """
    M, K = a.shape
    K2, N = b.shape
    assert K == K2

    tm = min(256, _round_up(M, 8))          # sublane-aligned row tile
    tn = min(256, _round_up(N, LANE))       # lane-dense output tile
    tk = min(512, _round_up(K, LANE))       # 128-aligned contraction tile
    Mp, Np, Kp = _round_up(M, tm), _round_up(N, tn), _round_up(K, tk)

    a_p = jnp.zeros((Mp, Kp), ACT_DTYPE).at[:M, :K].set(a.astype(ACT_DTYPE))
    b_p = jnp.zeros((Kp, Np), ACT_DTYPE).at[:K, :N].set(b.astype(ACT_DTYPE))
    scale_p = jnp.zeros((1, Np), jnp.float32).at[0, :N].set(
        scale.astype(jnp.float32))
    bias_p = jnp.zeros((1, Np), jnp.float32).at[0, :N].set(
        bias.astype(jnp.float32))

    grid = (Mp // tm, Np // tn, Kp // tk)
    in_specs = [
        pl.BlockSpec((tm, tk), lambda i, j, k: (i, k)),
        pl.BlockSpec((tk, tn), lambda i, j, k: (k, j)),
        pl.BlockSpec((1, tn), lambda i, j, k: (0, j)),
        pl.BlockSpec((1, tn), lambda i, j, k: (0, j)),
    ]
    operands = [a_p, b_p, scale_p, bias_p]
    if residual is None:
        kernel = functools.partial(_gemm_kernel, relu=relu)
    else:
        res_p = jnp.zeros((Mp, Np), ACT_DTYPE).at[:M, :N].set(
            residual.astype(ACT_DTYPE))
        in_specs.append(pl.BlockSpec((tm, tn), lambda i, j, k: (i, j)))
        operands.append(res_p)
        kernel = functools.partial(_gemm_res_kernel, relu=relu)

    out = pl.pallas_call(
        kernel,
        out_shape=jax.ShapeDtypeStruct((Mp, Np), ACT_DTYPE),
        grid=grid,
        in_specs=in_specs,
        out_specs=pl.BlockSpec((tm, tn), lambda i, j, k: (i, j)),
        scratch_shapes=[pltpu.VMEM((tm, tn), jnp.float32)],
        compiler_params=pltpu.CompilerParams(
            dimension_semantics=("parallel", "parallel", "arbitrary"),
            vmem_limit_bytes=VMEM_LIMIT),
    )(*operands)
    return out[:M, :N]


def _max9_kernel(x_ref, o_ref):
    """Elementwise max over the 9 shifted views of a 3x3 max-pool window."""
    m = x_ref[0]
    for i in range(1, 9):
        m = jnp.maximum(m, x_ref[i])
    o_ref[...] = m


def max_over_windows(stacked):
    """stacked: (9, M, C) -> (M, C) elementwise maximum, lane-dense + tiled."""
    _, M, C = stacked.shape
    total = M * C
    rows = _round_up(total, LANE) // LANE
    tr = min(512, _round_up(rows, 16))        # bf16 sublane-packed tile
    rows_p = _round_up(rows, tr)

    flat = jnp.zeros((9, rows_p * LANE), ACT_DTYPE)
    flat = flat.at[:, :total].set(stacked.astype(ACT_DTYPE).reshape(9, total))
    flat = flat.reshape(9, rows_p, LANE)

    out = pl.pallas_call(
        _max9_kernel,
        out_shape=jax.ShapeDtypeStruct((rows_p, LANE), ACT_DTYPE),
        grid=(rows_p // tr,),
        in_specs=[pl.BlockSpec((9, tr, LANE), lambda i: (0, i, 0))],
        out_specs=pl.BlockSpec((tr, LANE), lambda i: (i, 0)),
        compiler_params=pltpu.CompilerParams(
            dimension_semantics=("parallel",),
            vmem_limit_bytes=VMEM_LIMIT),
    )(flat)
    return out.reshape(rows_p * LANE)[:total].reshape(M, C)


def _tail_kernel(x_ref, w_ref, b_ref, emb_ref, logit_ref, *, inv_hw):
    """Fused global-average-pool + fc: one grid step per batch element."""
    x = x_ref[0].astype(jnp.float32)                       # (HWp, Cp)
    emb = jnp.sum(x, axis=0, keepdims=True) * inv_hw       # (1, Cp)
    emb_ref[0] = emb
    logit_ref[0] = jnp.dot(emb, w_ref[...].astype(jnp.float32),
                           preferred_element_type=jnp.float32) + b_ref[...]


def avgpool_fc(x, fc_w, fc_b):
    """x NHWC -> (logits, emb) in a single pallas_call (fused tail)."""
    B, H, W, C = x.shape
    HW = H * W
    HWp = _round_up(HW, 8)
    Cp = _round_up(C, LANE)
    NC = fc_w.shape[0]
    NCp = _round_up(NC, LANE)

    x_p = jnp.zeros((B, HWp, Cp), ACT_DTYPE).at[:, :HW, :C].set(
        x.reshape(B, HW, C).astype(ACT_DTYPE))
    w_p = jnp.zeros((Cp, NCp), jnp.float32).at[:C, :NC].set(
        fc_w.T.astype(jnp.float32))
    b_p = jnp.zeros((1, NCp), jnp.float32).at[0, :NC].set(
        fc_b.astype(jnp.float32))

    kernel = functools.partial(_tail_kernel, inv_hw=1.0 / HW)
    emb_p, logits_p = pl.pallas_call(
        kernel,
        out_shape=(jax.ShapeDtypeStruct((B, 1, Cp), jnp.float32),
                   jax.ShapeDtypeStruct((B, 1, NCp), jnp.float32)),
        grid=(B,),
        in_specs=[
            pl.BlockSpec((1, HWp, Cp), lambda b: (b, 0, 0)),
            pl.BlockSpec((Cp, NCp), lambda b: (0, 0)),
            pl.BlockSpec((1, NCp), lambda b: (0, 0)),
        ],
        out_specs=(pl.BlockSpec((1, 1, Cp), lambda b: (b, 0, 0)),
                   pl.BlockSpec((1, 1, NCp), lambda b: (b, 0, 0))),
        compiler_params=pltpu.CompilerParams(
            dimension_semantics=("parallel",),
            vmem_limit_bytes=VMEM_LIMIT),
    )(x_p, w_p, b_p)
    emb = emb_p[:, 0, :C]
    logits = logits_p[:, 0, :NC]
    return logits, emb


# ----------------------------------------------------------------------------
# Glue: im2col, weight packing, BN folding (pure data movement / param prep)
# ----------------------------------------------------------------------------
def im2col(x, kh, kw, stride, pad):
    """x: (B, H, W, C) NHWC bf16 -> patches (B*Ho*Wo, kh*kw*C) bf16."""
    x = jnp.pad(x, ((0, 0), (pad, pad), (pad, pad), (0, 0)))
    B, Hp, Wp, C = x.shape
    Ho = (Hp - kh) // stride + 1
    Wo = (Wp - kw) // stride + 1
    cols = []
    for i in range(kh):
        for j in range(kw):
            cols.append(x[:, i:i + stride * Ho:stride,
                          j:j + stride * Wo:stride, :])
    patches = jnp.stack(cols, axis=-2)            # (B, Ho, Wo, kh*kw, C)
    return patches.reshape(B * Ho * Wo, kh * kw * C), (B, Ho, Wo)


def conv_weight_to_mat(w):
    """PyTorch conv weight (Cout, Cin, kh, kw) -> GEMM matrix (kh*kw*Cin, Cout)."""
    cout, cin, kh, kw = w.shape
    return jnp.transpose(w, (2, 3, 1, 0)).reshape(kh * kw * cin, cout)


def fold_bn(bn):
    """Eval-mode BN -> (scale, bias):  y = x*scale + bias."""
    gamma, beta, mean, var = bn
    scale = gamma / jnp.sqrt(var + BN_EPS)
    bias = beta - mean * scale
    return scale, bias


def conv_bn(x, w, bn, stride, pad, relu, residual=None):
    """Fused conv -> BN -> (+residual) -> (ReLU).  x NHWC bf16."""
    cout, cin, kh, kw = w.shape
    patches, (B, Ho, Wo) = im2col(x, kh, kw, stride, pad)
    wmat = conv_weight_to_mat(w)
    scale, bias = fold_bn(bn)
    res_flat = None
    if residual is not None:
        res_flat = residual.reshape(B * Ho * Wo, cout)
    out = fused_matmul(patches, wmat, scale, bias, residual=res_flat, relu=relu)
    return out.reshape(B, Ho, Wo, cout)


def maxpool_3x3_s2_p1(x):
    """PyTorch MaxPool2d(kernel=3, stride=2, padding=1) on NHWC input."""
    B, H, W, C = x.shape
    xp = jnp.pad(x, ((0, 0), (1, 1), (1, 1), (0, 0)),
                 constant_values=float("-inf"))
    Hp, Wp = H + 2, W + 2
    Ho = (Hp - 3) // 2 + 1
    Wo = (Wp - 3) // 2 + 1
    views = []
    for i in range(3):
        for j in range(3):
            views.append(xp[:, i:i + 2 * Ho:2, j:j + 2 * Wo:2, :])
    stacked = jnp.stack(views, axis=0).reshape(9, B * Ho * Wo, C)
    out = max_over_windows(stacked)
    return out.reshape(B, Ho, Wo, C)


# ----------------------------------------------------------------------------
# Tiny ImageNet-style ResNet (deterministic synthetic parameters)
# ----------------------------------------------------------------------------
def make_bn(c):
    return (jnp.ones((c,), jnp.float32),   # gamma
            jnp.zeros((c,), jnp.float32),  # beta
            jnp.zeros((c,), jnp.float32),  # running_mean
            jnp.ones((c,), jnp.float32))   # running_var


def init_resnet_params(key, c_in=3, c1=8, c2=16, num_classes=10):
    ks = jax.random.split(key, 8)

    def w(k, shape):
        fan_in = shape[1] * shape[2] * shape[3]
        return (jax.random.normal(k, shape, jnp.float32) *
                (2.0 / fan_in) ** 0.5)

    p = {}
    p["conv1_w"] = w(ks[0], (c1, c_in, 7, 7));  p["bn1"] = make_bn(c1)
    # layer1, BasicBlock(c1 -> c1, stride 1)
    p["l1_conv1_w"] = w(ks[1], (c1, c1, 3, 3)); p["l1_bn1"] = make_bn(c1)
    p["l1_conv2_w"] = w(ks[2], (c1, c1, 3, 3)); p["l1_bn2"] = make_bn(c1)
    # layer2, BasicBlock(c1 -> c2, stride 2, with 1x1 downsample)
    p["l2_conv1_w"] = w(ks[3], (c2, c1, 3, 3)); p["l2_bn1"] = make_bn(c2)
    p["l2_conv2_w"] = w(ks[4], (c2, c2, 3, 3)); p["l2_bn2"] = make_bn(c2)
    p["l2_ds_w"] = w(ks[5], (c2, c1, 1, 1));    p["l2_ds_bn"] = make_bn(c2)
    # fc
    p["fc_w"] = jax.random.normal(ks[6], (num_classes, c2),
                                  jnp.float32) * (1.0 / c2) ** 0.5
    p["fc_b"] = jnp.zeros((num_classes,), jnp.float32)
    return p


def basic_block(x, conv1_w, bn1, conv2_w, bn2, stride, ds_w=None, ds_bn=None):
    identity = x
    out = conv_bn(x, conv1_w, bn1, stride=stride, pad=1, relu=True)
    if ds_w is not None:
        identity = conv_bn(x, ds_w, ds_bn, stride=stride, pad=0, relu=False)
    # torchvision BasicBlock: bn2 output + identity, then ReLU
    out = conv_bn(out, conv2_w, bn2, stride=1, pad=1, relu=True,
                  residual=identity)
    return out


class ResnetWrapperPallas:
    """Pallas equivalent of ResnetWrapper: forward(x, use_linear) -> out or (out, emb)."""

    def __init__(self, params):
        self.params = params
        # PyTorch fc.weight has shape (num_classes, emb_dim); shape[-1] = emb_dim
        self.ed = int(params["fc_w"].shape[-1])
        self._fwd = jax.jit(self._resnet_forward)

    def emb_dim(self):
        return self.ed

    def _resnet_forward(self, x_nchw):
        p = self.params
        x = jnp.transpose(x_nchw, (0, 2, 3, 1)).astype(ACT_DTYPE)  # -> NHWC
        # stem
        x = conv_bn(x, p["conv1_w"], p["bn1"], stride=2, pad=3, relu=True)
        x = maxpool_3x3_s2_p1(x)
        # layer1
        x = basic_block(x, p["l1_conv1_w"], p["l1_bn1"],
                        p["l1_conv2_w"], p["l1_bn2"], stride=1)
        # layer2 (downsample)
        x = basic_block(x, p["l2_conv1_w"], p["l2_bn1"],
                        p["l2_conv2_w"], p["l2_bn2"], stride=2,
                        ds_w=p["l2_ds_w"], ds_bn=p["l2_ds_bn"])
        # fused tail: global avg pool -> emb (fc input, what the hook grabs) -> fc
        logits, emb = avgpool_fc(x, p["fc_w"], p["fc_b"])
        return logits, emb

    def forward(self, x, use_linear=False):
        logits, emb = self._fwd(x)
        if not use_linear:
            return logits
        return logits, emb


# ----------------------------------------------------------------------------
if __name__ == "__main__":
    key = jax.random.PRNGKey(0)
    k_param, k_x = jax.random.split(key)

    params = init_resnet_params(k_param)
    model = ResnetWrapperPallas(params)

    # NCHW input, matching the PyTorch module's expectation.
    x = jax.random.normal(k_x, (2, 3, 16, 16), jnp.float32)

    logits = model.forward(x, use_linear=False)
    logits2, emb = model.forward(x, use_linear=True)
    jax.block_until_ready((logits, logits2, emb))

    assert logits.shape == (2, 10)
    assert logits2.shape == (2, 10)
    assert emb.shape == (2, model.emb_dim())
    assert bool(jnp.allclose(logits, logits2))
    assert jnp.all(jnp.isfinite(logits)) and jnp.all(jnp.isfinite(emb))

    print("KERNEL_OK")
</pallas_src>

<mosaic_0001>
module attributes {stable_mosaic.version = 11 : i64} {
  func.func @_gemm_kernel(%arg0: i32, %arg1: i32, %arg2: i32, %arg3: memref<128x256xbf16, #tpu.memory_space<vmem>>, %arg4: memref<256x128xbf16, #tpu.memory_space<vmem>>, %arg5: memref<1x128xf32, #tpu.memory_space<vmem>>, %arg6: memref<1x128xf32, #tpu.memory_space<vmem>>, %arg7: memref<128x128xbf16, #tpu.memory_space<vmem>>, %arg8: memref<128x128xf32, #tpu.memory_space<vmem>>) attributes {dimension_semantics = [#tpu.dimension_semantics<parallel>, #tpu.dimension_semantics<parallel>, #tpu.dimension_semantics<arbitrary>], iteration_bounds = array<i64: 1, 1, 1>, scalar_prefetch = 0 : i64, scratch_operands = 1 : i64, tpu.core_type = #tpu.core_type<tc>, window_params = [{transform_indices = @transform_0, window_bounds = array<i64: 128, 256>}, {transform_indices = @transform_1, window_bounds = array<i64: 256, 128>}, {transform_indices = @transform_2, window_bounds = array<i64: 1, 128>}, {transform_indices = @transform_3, window_bounds = array<i64: 1, 128>}, {transform_indices = @transform_4, window_bounds = array<i64: 128, 128>}]} {
    %c0_i32 = arith.constant 0 : i32
    %0 = arith.cmpi eq, %arg2, %c0_i32 : i32
    %1 = arith.extui %0 : i1 to i32
    %c0_i32_0 = arith.constant 0 : i32
    %2 = arith.cmpi ne, %1, %c0_i32_0 : i32
    scf.if %2 {
      %cst_10 = arith.constant 0.000000e+00 : f32
      %12 = vector.broadcast %cst_10 : f32 to vector<128x128xf32>
      %c0_11 = arith.constant 0 : index
      %c0_12 = arith.constant 0 : index
      %13 = vector.load %arg8[%c0_11, %c0_12] : memref<128x128xf32, #tpu.memory_space<vmem>>, vector<128x128xf32>
      tpu.vector_store %arg8[%c0_11, %c0_12], %12 {strides = array<i32>} : memref<128x128xf32, #tpu.memory_space<vmem>>, vector<128x128xf32>,
    } else {
    }
    %c0 = arith.constant 0 : index
    %c0_1 = arith.constant 0 : index
    %3 = vector.load %arg8[%c0, %c0_1] : memref<128x128xf32, #tpu.memory_space<vmem>>, vector<128x128xf32>
    %c0_2 = arith.constant 0 : index
    %c0_3 = arith.constant 0 : index
    %4 = vector.load %arg3[%c0_2, %c0_3] : memref<128x256xbf16, #tpu.memory_space<vmem>>, vector<128x256xbf16>
    %c0_4 = arith.constant 0 : index
    %c0_5 = arith.constant 0 : index
    %5 = vector.load %arg4[%c0_4, %c0_5] : memref<256x128xbf16, #tpu.memory_space<vmem>>, vector<256x128xbf16>
    %cst = arith.constant dense<0.000000e+00> : vector<128x128xf32>
    %6 = tpu.matmul %4, %5, %cst {dimension_numbers = #tpu.dot_dimension_numbers<[1], [0], [0], [1], [0, 0, 1, 1], [], []>} : vector<128x256xbf16>, vector<256x128xbf16>, vector<128x128xf32> -> vector<128x128xf32>
    %7 = arith.addf %3, %6 : vector<128x128xf32>
    %c0_6 = arith.constant 0 : index
    %c0_7 = arith.constant 0 : index
    %8 = vector.load %arg8[%c0_6, %c0_7] : memref<128x128xf32, #tpu.memory_space<vmem>>, vector<128x128xf32>
    tpu.vector_store %arg8[%c0_6, %c0_7], %7 {strides = array<i32>} : memref<128x128xf32, #tpu.memory_space<vmem>>, vector<128x128xf32>,
    %c0_i32_8 = arith.constant 0 : i32
    %9 = arith.cmpi eq, %arg2, %c0_i32_8 : i32
    %10 = arith.extui %9 : i1 to i32
    %c0_i32_9 = arith.constant 0 : i32
    %11 = arith.cmpi ne, %10, %c0_i32_9 : i32
    scf.if %11 {
      %c0_10 = arith.constant 0 : index
      %c0_11 = arith.constant 0 : index
      %12 = vector.load %arg8[%c0_10, %c0_11] : memref<128x128xf32, #tpu.memory_space<vmem>>, vector<128x128xf32>
      %c0_12 = arith.constant 0 : index
      %c0_13 = arith.constant 0 : index
      %13 = vector.load %arg5[%c0_12, %c0_13] : memref<1x128xf32, #tpu.memory_space<vmem>>, vector<1x128xf32>
      %14 = vector.broadcast %13 : vector<1x128xf32> to vector<128x128xf32>
      %15 = arith.mulf %12, %14 : vector<128x128xf32>
      %c0_14 = arith.constant 0 : index
      %c0_15 = arith.constant 0 : index
      %16 = vector.load %arg6[%c0_14, %c0_15] : memref<1x128xf32, #tpu.memory_space<vmem>>, vector<1x128xf32>
      %17 = vector.broadcast %16 : vector<1x128xf32> to vector<128x128xf32>
      %18 = arith.addf %15, %17 : vector<128x128xf32>
      %cst_16 = arith.constant 0.000000e+00 : f32
      %19 = vector.broadcast %cst_16 : f32 to vector<128x128xf32>
      %20 = arith.maximumf %18, %19 : vector<128x128xf32>
      %21 = arith.truncf %20 : vector<128x128xf32> to vector<128x128xbf16>
      %c0_17 = arith.constant 0 : index
      %c0_18 = arith.constant 0 : index
      %22 = vector.load %arg7[%c0_17, %c0_18] : memref<128x128xbf16, #tpu.memory_space<vmem>>, vector<128x128xbf16>
      tpu.vector_store %arg7[%c0_17, %c0_18], %21 {strides = array<i32>} : memref<128x128xbf16, #tpu.memory_space<vmem>>, vector<128x128xbf16>,
    } else {
    }
    return
  }
  func.func @transform_0(%arg0: i32, %arg1: i32, %arg2: i32) -> (i32, i32) {
    %c0_i32 = arith.constant 0 : i32
    return %arg0, %arg2 : i32, i32
  }
  func.func @transform_1(%arg0: i32, %arg1: i32, %arg2: i32) -> (i32, i32) {
    %c0_i32 = arith.constant 0 : i32
    return %arg2, %arg1 : i32, i32
  }
  func.func @transform_2(%arg0: i32, %arg1: i32, %arg2: i32) -> (i32, i32) {
    %c0_i32 = arith.constant 0 : i32
    %c0_i32_0 = arith.constant 0 : i32
    return %c0_i32, %arg1 : i32, i32
  }
  func.func @transform_3(%arg0: i32, %arg1: i32, %arg2: i32) -> (i32, i32) {
    %c0_i32 = arith.constant 0 : i32
    %c0_i32_0 = arith.constant 0 : i32
    return %c0_i32, %arg1 : i32, i32
  }
  func.func @transform_4(%arg0: i32, %arg1: i32, %arg2: i32) -> (i32, i32) {
    %c0_i32 = arith.constant 0 : i32
    return %arg0, %arg1 : i32, i32
  }
}

module attributes {stable_mosaic.version = 11 : i64} {
  func.func @_max9_kernel(%arg0: i32, %arg1: memref<9x16x128xbf16, #tpu.memory_space<vmem>>, %arg2: memref<16x128xbf16, #tpu.memory_space<vmem>>) attributes {dimension_semantics = [#tpu.dimension_semantics<parallel>], iteration_bounds = array<i64: 1>, scalar_prefetch = 0 : i64, scratch_operands = 0 : i64, tpu.core_type = #tpu.core_type<tc>, window_params = [{transform_indices = @transform_0, window_bounds = array<i64: 9, 16, 128>}, {transform_indices = @transform_1, window_bounds = array<i64: 16, 128>}]} {
    %c0 = arith.constant 0 : index
    %c0_0 = arith.constant 0 : index
    %c0_1 = arith.constant 0 : index
    %0 = vector.load %arg1[%c0, %c0_0, %c0_1] : memref<9x16x128xbf16, #tpu.memory_space<vmem>>, vector<1x16x128xbf16>
    %1 = vector.shape_cast %0 : vector<1x16x128xbf16> to vector<16x128xbf16>
    %c1 = arith.constant 1 : index
    %c0_2 = arith.constant 0 : index
    %c0_3 = arith.constant 0 : index
    %2 = vector.load %arg1[%c1, %c0_2, %c0_3] : memref<9x16x128xbf16, #tpu.memory_space<vmem>>, vector<1x16x128xbf16>
    %3 = vector.shape_cast %2 : vector<1x16x128xbf16> to vector<16x128xbf16>
    %4 = arith.maximumf %1, %3 : vector<16x128xbf16>
    %c2 = arith.constant 2 : index
    %c0_4 = arith.constant 0 : index
    %c0_5 = arith.constant 0 : index
    %5 = vector.load %arg1[%c2, %c0_4, %c0_5] : memref<9x16x128xbf16, #tpu.memory_space<vmem>>, vector<1x16x128xbf16>
    %6 = vector.shape_cast %5 : vector<1x16x128xbf16> to vector<16x128xbf16>
    %7 = arith.maximumf %4, %6 : vector<16x128xbf16>
    %c3 = arith.constant 3 : index
    %c0_6 = arith.constant 0 : index
    %c0_7 = arith.constant 0 : index
    %8 = vector.load %arg1[%c3, %c0_6, %c0_7] : memref<9x16x128xbf16, #tpu.memory_space<vmem>>, vector<1x16x128xbf16>
    %9 = vector.shape_cast %8 : vector<1x16x128xbf16> to vector<16x128xbf16>
    %10 = arith.maximumf %7, %9 : vector<16x128xbf16>
    %c4 = arith.constant 4 : index
    %c0_8 = arith.constant 0 : index
    %c0_9 = arith.constant 0 : index
    %11 = vector.load %arg1[%c4, %c0_8, %c0_9] : memref<9x16x128xbf16, #tpu.memory_space<vmem>>, vector<1x16x128xbf16>
    %12 = vector.shape_cast %11 : vector<1x16x128xbf16> to vector<16x128xbf16>
    %13 = arith.maximumf %10, %12 : vector<16x128xbf16>
    %c5 = arith.constant 5 : index
    %c0_10 = arith.constant 0 : index
    %c0_11 = arith.constant 0 : index
    %14 = vector.load %arg1[%c5, %c0_10, %c0_11] : memref<9x16x128xbf16, #tpu.memory_space<vmem>>, vector<1x16x128xbf16>
    %15 = vector.shape_cast %14 : vector<1x16x128xbf16> to vector<16x128xbf16>
    %16 = arith.maximumf %13, %15 : vector<16x128xbf16>
    %c6 = arith.constant 6 : index
    %c0_12 = arith.constant 0 : index
    %c0_13 = arith.constant 0 : index
    %17 = vector.load %arg1[%c6, %c0_12, %c0_13] : memref<9x16x128xbf16, #tpu.memory_space<vmem>>, vector<1x16x128xbf16>
    %18 = vector.shape_cast %17 : vector<1x16x128xbf16> to vector<16x128xbf16>
    %19 = arith.maximumf %16, %18 : vector<16x128xbf16>
    %c7 = arith.constant 7 : index
    %c0_14 = arith.constant 0 : index
    %c0_15 = arith.constant 0 : index
    %20 = vector.load %arg1[%c7, %c0_14, %c0_15] : memref<9x16x128xbf16, #tpu.memory_space<vmem>>, vector<1x16x128xbf16>
    %21 = vector.shape_cast %20 : vector<1x16x128xbf16> to vector<16x128xbf16>
    %22 = arith.maximumf %19, %21 : vector<16x128xbf16>
    %c8 = arith.constant 8 : index
    %c0_16 = arith.constant 0 : index
    %c0_17 = arith.constant 0 : index
    %23 = vector.load %arg1[%c8, %c0_16, %c0_17] : memref<9x16x128xbf16, #tpu.memory_space<vmem>>, vector<1x16x128xbf16>
    %24 = vector.shape_cast %23 : vector<1x16x128xbf16> to vector<16x128xbf16>
    %25 = arith.maximumf %22, %24 : vector<16x128xbf16>
    %c0_18 = arith.constant 0 : index
    %c0_19 = arith.constant 0 : index
    %26 = vector.load %arg2[%c0_18, %c0_19] : memref<16x128xbf16, #tpu.memory_space<vmem>>, vector<16x128xbf16>
    tpu.vector_store %arg2[%c0_18, %c0_19], %25 {strides = array<i32>} : memref<16x128xbf16, #tpu.memory_space<vmem>>, vector<16x128xbf16>,
    return
  }
  func.func @transform_0(%arg0: i32) -> (i32, i32, i32) {
    %c0_i32 = arith.constant 0 : i32
    %c0_i32_0 = arith.constant 0 : i32
    %c0_i32_1 = arith.constant 0 : i32
    return %c0_i32, %arg0, %c0_i32_0 : i32, i32, i32
  }
  func.func @transform_1(%arg0: i32) -> (i32, i32) {
    %c0_i32 = arith.constant 0 : i32
    %c0_i32_0 = arith.constant 0 : i32
    return %arg0, %c0_i32 : i32, i32
  }
}

module attributes {stable_mosaic.version = 11 : i64} {
  func.func @_gemm_kernel(%arg0: i32, %arg1: i32, %arg2: i32, %arg3: memref<32x128xbf16, #tpu.memory_space<vmem>>, %arg4: memref<128x128xbf16, #tpu.memory_space<vmem>>, %arg5: memref<1x128xf32, #tpu.memory_space<vmem>>, %arg6: memref<1x128xf32, #tpu.memory_space<vmem>>, %arg7: memref<32x128xbf16, #tpu.memory_space<vmem>>, %arg8: memref<32x128xf32, #tpu.memory_space<vmem>>) attributes {dimension_semantics = [#tpu.dimension_semantics<parallel>, #tpu.dimension_semantics<parallel>, #tpu.dimension_semantics<arbitrary>], iteration_bounds = array<i64: 1, 1, 1>, scalar_prefetch = 0 : i64, scratch_operands = 1 : i64, tpu.core_type = #tpu.core_type<tc>, window_params = [{transform_indices = @transform_0, window_bounds = array<i64: 32, 128>}, {transform_indices = @transform_1, window_bounds = array<i64: 128, 128>}, {transform_indices = @transform_2, window_bounds = array<i64: 1, 128>}, {transform_indices = @transform_3, window_bounds = array<i64: 1, 128>}, {transform_indices = @transform_4, window_bounds = array<i64: 32, 128>}]} {
    %c0_i32 = arith.constant 0 : i32
    %0 = arith.cmpi eq, %arg2, %c0_i32 : i32
    %1 = arith.extui %0 : i1 to i32
    %c0_i32_0 = arith.constant 0 : i32
    %2 = arith.cmpi ne, %1, %c0_i32_0 : i32
    scf.if %2 {
      %cst_10 = arith.constant 0.000000e+00 : f32
      %12 = vector.broadcast %cst_10 : f32 to vector<32x128xf32>
      %c0_11 = arith.constant 0 : index
      %c0_12 = arith.constant 0 : index
      %13 = vector.load %arg8[%c0_11, %c0_12] : memref<32x128xf32, #tpu.memory_space<vmem>>, vector<32x128xf32>
      tpu.vector_store %arg8[%c0_11, %c0_12], %12 {strides = array<i32>} : memref<32x128xf32, #tpu.memory_space<vmem>>, vector<32x128xf32>,
    } else {
    }
    %c0 = arith.constant 0 : index
    %c0_1 = arith.constant 0 : index
    %3 = vector.load %arg8[%c0, %c0_1] : memref<32x128xf32, #tpu.memory_space<vmem>>, vector<32x128xf32>
    %c0_2 = arith.constant 0 : index
    %c0_3 = arith.constant 0 : index
    %4 = vector.load %arg3[%c0_2, %c0_3] : memref<32x128xbf16, #tpu.memory_space<vmem>>, vector<32x128xbf16>
    %c0_4 = arith.constant 0 : index
    %c0_5 = arith.constant 0 : index
    %5 = vector.load %arg4[%c0_4, %c0_5] : memref<128x128xbf16, #tpu.memory_space<vmem>>, vector<128x128xbf16>
    %cst = arith.constant dense<0.000000e+00> : vector<32x128xf32>
    %6 = tpu.matmul %4, %5, %cst {dimension_numbers = #tpu.dot_dimension_numbers<[1], [0], [0], [1], [0, 0, 1, 1], [], []>} : vector<32x128xbf16>, vector<128x128xbf16>, vector<32x128xf32> -> vector<32x128xf32>
    %7 = arith.addf %3, %6 : vector<32x128xf32>
    %c0_6 = arith.constant 0 : index
    %c0_7 = arith.constant 0 : index
    %8 = vector.load %arg8[%c0_6, %c0_7] : memref<32x128xf32, #tpu.memory_space<vmem>>, vector<32x128xf32>
    tpu.vector_store %arg8[%c0_6, %c0_7], %7 {strides = array<i32>} : memref<32x128xf32, #tpu.memory_space<vmem>>, vector<32x128xf32>,
    %c0_i32_8 = arith.constant 0 : i32
    %9 = arith.cmpi eq, %arg2, %c0_i32_8 : i32
    %10 = arith.extui %9 : i1 to i32
    %c0_i32_9 = arith.constant 0 : i32
    %11 = arith.cmpi ne, %10, %c0_i32_9 : i32
    scf.if %11 {
      %c0_10 = arith.constant 0 : index
      %c0_11 = arith.constant 0 : index
      %12 = vector.load %arg8[%c0_10, %c0_11] : memref<32x128xf32, #tpu.memory_space<vmem>>, vector<32x128xf32>
      %c0_12 = arith.constant 0 : index
      %c0_13 = arith.constant 0 : index
      %13 = vector.load %arg5[%c0_12, %c0_13] : memref<1x128xf32, #tpu.memory_space<vmem>>, vector<1x128xf32>
      %14 = vector.broadcast %13 : vector<1x128xf32> to vector<32x128xf32>
      %15 = arith.mulf %12, %14 : vector<32x128xf32>
      %c0_14 = arith.constant 0 : index
      %c0_15 = arith.constant 0 : index
      %16 = vector.load %arg6[%c0_14, %c0_15] : memref<1x128xf32, #tpu.memory_space<vmem>>, vector<1x128xf32>
      %17 = vector.broadcast %16 : vector<1x128xf32> to vector<32x128xf32>
      %18 = arith.addf %15, %17 : vector<32x128xf32>
      %cst_16 = arith.constant 0.000000e+00 : f32
      %19 = vector.broadcast %cst_16 : f32 to vector<32x128xf32>
      %20 = arith.maximumf %18, %19 : vector<32x128xf32>
      %21 = arith.truncf %20 : vector<32x128xf32> to vector<32x128xbf16>
      %c0_17 = arith.constant 0 : index
      %c0_18 = arith.constant 0 : index
      %22 = vector.load %arg7[%c0_17, %c0_18] : memref<32x128xbf16, #tpu.memory_space<vmem>>, vector<32x128xbf16>
      tpu.vector_store %arg7[%c0_17, %c0_18], %21 {strides = array<i32>} : memref<32x128xbf16, #tpu.memory_space<vmem>>, vector<32x128xbf16>,
    } else {
    }
    return
  }
  func.func @transform_0(%arg0: i32, %arg1: i32, %arg2: i32) -> (i32, i32) {
    %c0_i32 = arith.constant 0 : i32
    return %arg0, %arg2 : i32, i32
  }
  func.func @transform_1(%arg0: i32, %arg1: i32, %arg2: i32) -> (i32, i32) {
    %c0_i32 = arith.constant 0 : i32
    return %arg2, %arg1 : i32, i32
  }
  func.func @transform_2(%arg0: i32, %arg1: i32, %arg2: i32) -> (i32, i32) {
    %c0_i32 = arith.constant 0 : i32
    %c0_i32_0 = arith.constant 0 : i32
    return %c0_i32, %arg1 : i32, i32
  }
  func.func @transform_3(%arg0: i32, %arg1: i32, %arg2: i32) -> (i32, i32) {
    %c0_i32 = arith.constant 0 : i32
    %c0_i32_0 = arith.constant 0 : i32
    return %c0_i32, %arg1 : i32, i32
  }
  func.func @transform_4(%arg0: i32, %arg1: i32, %arg2: i32) -> (i32, i32) {
    %c0_i32 = arith.constant 0 : i32
    return %arg0, %arg1 : i32, i32
  }
}

module attributes {stable_mosaic.version = 11 : i64} {
  func.func @_gemm_res_kernel(%arg0: i32, %arg1: i32, %arg2: i32, %arg3: memref<32x128xbf16, #tpu.memory_space<vmem>>, %arg4: memref<128x128xbf16, #tpu.memory_space<vmem>>, %arg5: memref<1x128xf32, #tpu.memory_space<vmem>>, %arg6: memref<1x128xf32, #tpu.memory_space<vmem>>, %arg7: memref<32x128xbf16, #tpu.memory_space<vmem>>, %arg8: memref<32x128xbf16, #tpu.memory_space<vmem>>, %arg9: memref<32x128xf32, #tpu.memory_space<vmem>>) attributes {dimension_semantics = [#tpu.dimension_semantics<parallel>, #tpu.dimension_semantics<parallel>, #tpu.dimension_semantics<arbitrary>], iteration_bounds = array<i64: 1, 1, 1>, scalar_prefetch = 0 : i64, scratch_operands = 1 : i64, tpu.core_type = #tpu.core_type<tc>, window_params = [{transform_indices = @transform_0, window_bounds = array<i64: 32, 128>}, {transform_indices = @transform_1, window_bounds = array<i64: 128, 128>}, {transform_indices = @transform_2, window_bounds = array<i64: 1, 128>}, {transform_indices = @transform_3, window_bounds = array<i64: 1, 128>}, {transform_indices = @transform_4, window_bounds = array<i64: 32, 128>}, {transform_indices = @transform_5, window_bounds = array<i64: 32, 128>}]} {
    %c0_i32 = arith.constant 0 : i32
    %0 = arith.cmpi eq, %arg2, %c0_i32 : i32
    %1 = arith.extui %0 : i1 to i32
    %c0_i32_0 = arith.constant 0 : i32
    %2 = arith.cmpi ne, %1, %c0_i32_0 : i32
    scf.if %2 {
      %cst_10 = arith.constant 0.000000e+00 : f32
      %12 = vector.broadcast %cst_10 : f32 to vector<32x128xf32>
      %c0_11 = arith.constant 0 : index
      %c0_12 = arith.constant 0 : index
      %13 = vector.load %arg9[%c0_11, %c0_12] : memref<32x128xf32, #tpu.memory_space<vmem>>, vector<32x128xf32>
      tpu.vector_store %arg9[%c0_11, %c0_12], %12 {strides = array<i32>} : memref<32x128xf32, #tpu.memory_space<vmem>>, vector<32x128xf32>,
    } else {
    }
    %c0 = arith.constant 0 : index
    %c0_1 = arith.constant 0 : index
    %3 = vector.load %arg9[%c0, %c0_1] : memref<32x128xf32, #tpu.memory_space<vmem>>, vector<32x128xf32>
    %c0_2 = arith.constant 0 : index
    %c0_3 = arith.constant 0 : index
    %4 = vector.load %arg3[%c0_2, %c0_3] : memref<32x128xbf16, #tpu.memory_space<vmem>>, vector<32x128xbf16>
    %c0_4 = arith.constant 0 : index
    %c0_5 = arith.constant 0 : index
    %5 = vector.load %arg4[%c0_4, %c0_5] : memref<128x128xbf16, #tpu.memory_space<vmem>>, vector<128x128xbf16>
    %cst = arith.constant dense<0.000000e+00> : vector<32x128xf32>
    %6 = tpu.matmul %4, %5, %cst {dimension_numbers = #tpu.dot_dimension_numbers<[1], [0], [0], [1], [0, 0, 1, 1], [], []>} : vector<32x128xbf16>, vector<128x128xbf16>, vector<32x128xf32> -> vector<32x128xf32>
    %7 = arith.addf %3, %6 : vector<32x128xf32>
    %c0_6 = arith.constant 0 : index
    %c0_7 = arith.constant 0 : index
    %8 = vector.load %arg9[%c0_6, %c0_7] : memref<32x128xf32, #tpu.memory_space<vmem>>, vector<32x128xf32>
    tpu.vector_store %arg9[%c0_6, %c0_7], %7 {strides = array<i32>} : memref<32x128xf32, #tpu.memory_space<vmem>>, vector<32x128xf32>,
    %c0_i32_8 = arith.constant 0 : i32
    %9 = arith.cmpi eq, %arg2, %c0_i32_8 : i32
    %10 = arith.extui %9 : i1 to i32
    %c0_i32_9 = arith.constant 0 : i32
    %11 = arith.cmpi ne, %10, %c0_i32_9 : i32
    scf.if %11 {
      %c0_10 = arith.constant 0 : index
      %c0_11 = arith.constant 0 : index
      %12 = vector.load %arg9[%c0_10, %c0_11] : memref<32x128xf32, #tpu.memory_space<vmem>>, vector<32x128xf32>
      %c0_12 = arith.constant 0 : index
      %c0_13 = arith.constant 0 : index
      %13 = vector.load %arg5[%c0_12, %c0_13] : memref<1x128xf32, #tpu.memory_space<vmem>>, vector<1x128xf32>
      %14 = vector.broadcast %13 : vector<1x128xf32> to vector<32x128xf32>
      %15 = arith.mulf %12, %14 : vector<32x128xf32>
      %c0_14 = arith.constant 0 : index
      %c0_15 = arith.constant 0 : index
      %16 = vector.load %arg6[%c0_14, %c0_15] : memref<1x128xf32, #tpu.memory_space<vmem>>, vector<1x128xf32>
      %17 = vector.broadcast %16 : vector<1x128xf32> to vector<32x128xf32>
      %18 = arith.addf %15, %17 : vector<32x128xf32>
      %c0_16 = arith.constant 0 : index
      %c0_17 = arith.constant 0 : index
      %19 = vector.load %arg7[%c0_16, %c0_17] : memref<32x128xbf16, #tpu.memory_space<vmem>>, vector<32x128xbf16>
      %20 = arith.extf %19 : vector<32x128xbf16> to vector<32x128xf32>
      %21 = arith.addf %18, %20 : vector<32x128xf32>
      %cst_18 = arith.constant 0.000000e+00 : f32
      %22 = vector.broadcast %cst_18 : f32 to vector<32x128xf32>
      %23 = arith.maximumf %21, %22 : vector<32x128xf32>
      %24 = arith.truncf %23 : vector<32x128xf32> to vector<32x128xbf16>
      %c0_19 = arith.constant 0 : index
      %c0_20 = arith.constant 0 : index
      %25 = vector.load %arg8[%c0_19, %c0_20] : memref<32x128xbf16, #tpu.memory_space<vmem>>, vector<32x128xbf16>
      tpu.vector_store %arg8[%c0_19, %c0_20], %24 {strides = array<i32>} : memref<32x128xbf16, #tpu.memory_space<vmem>>, vector<32x128xbf16>,
    } else {
    }
    return
  }
  func.func @transform_0(%arg0: i32, %arg1: i32, %arg2: i32) -> (i32, i32) {
    %c0_i32 = arith.constant 0 : i32
    return %arg0, %arg2 : i32, i32
  }
  func.func @transform_1(%arg0: i32, %arg1: i32, %arg2: i32) -> (i32, i32) {
    %c0_i32 = arith.constant 0 : i32
    return %arg2, %arg1 : i32, i32
  }
  func.func @transform_2(%arg0: i32, %arg1: i32, %arg2: i32) -> (i32, i32) {
    %c0_i32 = arith.constant 0 : i32
    %c0_i32_0 = arith.constant 0 : i32
    return %c0_i32, %arg1 : i32, i32
  }
  func.func @transform_3(%arg0: i32, %arg1: i32, %arg2: i32) -> (i32, i32) {
    %c0_i32 = arith.constant 0 : i32
    %c0_i32_0 = arith.constant 0 : i32
    return %c0_i32, %arg1 : i32, i32
  }
  func.func @transform_4(%arg0: i32, %arg1: i32, %arg2: i32) -> (i32, i32) {
    %c0_i32 = arith.constant 0 : i32
    return %arg0, %arg1 : i32, i32
  }
  func.func @transform_5(%arg0: i32, %arg1: i32, %arg2: i32) -> (i32, i32) {
    %c0_i32 = arith.constant 0 : i32
    return %arg0, %arg1 : i32, i32
  }
}

module attributes {stable_mosaic.version = 11 : i64} {
  func.func @_gemm_kernel(%arg0: i32, %arg1: i32, %arg2: i32, %arg3: memref<8x128xbf16, #tpu.memory_space<vmem>>, %arg4: memref<128x128xbf16, #tpu.memory_space<vmem>>, %arg5: memref<1x128xf32, #tpu.memory_space<vmem>>, %arg6: memref<1x128xf32, #tpu.memory_space<vmem>>, %arg7: memref<8x128xbf16, #tpu.memory_space<vmem>>, %arg8: memref<8x128xf32, #tpu.memory_space<vmem>>) attributes {dimension_semantics = [#tpu.dimension_semantics<parallel>, #tpu.dimension_semantics<parallel>, #tpu.dimension_semantics<arbitrary>], iteration_bounds = array<i64: 1, 1, 1>, scalar_prefetch = 0 : i64, scratch_operands = 1 : i64, tpu.core_type = #tpu.core_type<tc>, window_params = [{transform_indices = @transform_0, window_bounds = array<i64: 8, 128>}, {transform_indices = @transform_1, window_bounds = array<i64: 128, 128>}, {transform_indices = @transform_2, window_bounds = array<i64: 1, 128>}, {transform_indices = @transform_3, window_bounds = array<i64: 1, 128>}, {transform_indices = @transform_4, window_bounds = array<i64: 8, 128>}]} {
    %c0_i32 = arith.constant 0 : i32
    %0 = arith.cmpi eq, %arg2, %c0_i32 : i32
    %1 = arith.extui %0 : i1 to i32
    %c0_i32_0 = arith.constant 0 : i32
    %2 = arith.cmpi ne, %1, %c0_i32_0 : i32
    scf.if %2 {
      %cst_10 = arith.constant 0.000000e+00 : f32
      %12 = vector.broadcast %cst_10 : f32 to vector<8x128xf32>
      %c0_11 = arith.constant 0 : index
      %c0_12 = arith.constant 0 : index
      %13 = vector.load %arg8[%c0_11, %c0_12] : memref<8x128xf32, #tpu.memory_space<vmem>>, vector<8x128xf32>
      tpu.vector_store %arg8[%c0_11, %c0_12], %12 {strides = array<i32>} : memref<8x128xf32, #tpu.memory_space<vmem>>, vector<8x128xf32>,
    } else {
    }
    %c0 = arith.constant 0 : index
    %c0_1 = arith.constant 0 : index
    %3 = vector.load %arg8[%c0, %c0_1] : memref<8x128xf32, #tpu.memory_space<vmem>>, vector<8x128xf32>
    %c0_2 = arith.constant 0 : index
    %c0_3 = arith.constant 0 : index
    %4 = vector.load %arg3[%c0_2, %c0_3] : memref<8x128xbf16, #tpu.memory_space<vmem>>, vector<8x128xbf16>
    %c0_4 = arith.constant 0 : index
    %c0_5 = arith.constant 0 : index
    %5 = vector.load %arg4[%c0_4, %c0_5] : memref<128x128xbf16, #tpu.memory_space<vmem>>, vector<128x128xbf16>
    %cst = arith.constant dense<0.000000e+00> : vector<8x128xf32>
    %6 = tpu.matmul %4, %5, %cst {dimension_numbers = #tpu.dot_dimension_numbers<[1], [0], [0], [1], [0, 0, 1, 1], [], []>} : vector<8x128xbf16>, vector<128x128xbf16>, vector<8x128xf32> -> vector<8x128xf32>
    %7 = arith.addf %3, %6 : vector<8x128xf32>
    %c0_6 = arith.constant 0 : index
    %c0_7 = arith.constant 0 : index
    %8 = vector.load %arg8[%c0_6, %c0_7] : memref<8x128xf32, #tpu.memory_space<vmem>>, vector<8x128xf32>
    tpu.vector_store %arg8[%c0_6, %c0_7], %7 {strides = array<i32>} : memref<8x128xf32, #tpu.memory_space<vmem>>, vector<8x128xf32>,
    %c0_i32_8 = arith.constant 0 : i32
    %9 = arith.cmpi eq, %arg2, %c0_i32_8 : i32
    %10 = arith.extui %9 : i1 to i32
    %c0_i32_9 = arith.constant 0 : i32
    %11 = arith.cmpi ne, %10, %c0_i32_9 : i32
    scf.if %11 {
      %c0_10 = arith.constant 0 : index
      %c0_11 = arith.constant 0 : index
      %12 = vector.load %arg8[%c0_10, %c0_11] : memref<8x128xf32, #tpu.memory_space<vmem>>, vector<8x128xf32>
      %c0_12 = arith.constant 0 : index
      %c0_13 = arith.constant 0 : index
      %13 = vector.load %arg5[%c0_12, %c0_13] : memref<1x128xf32, #tpu.memory_space<vmem>>, vector<1x128xf32>
      %14 = vector.broadcast %13 : vector<1x128xf32> to vector<8x128xf32>
      %15 = arith.mulf %12, %14 : vector<8x128xf32>
      %c0_14 = arith.constant 0 : index
      %c0_15 = arith.constant 0 : index
      %16 = vector.load %arg6[%c0_14, %c0_15] : memref<1x128xf32, #tpu.memory_space<vmem>>, vector<1x128xf32>
      %17 = vector.broadcast %16 : vector<1x128xf32> to vector<8x128xf32>
      %18 = arith.addf %15, %17 : vector<8x128xf32>
      %cst_16 = arith.constant 0.000000e+00 : f32
      %19 = vector.broadcast %cst_16 : f32 to vector<8x128xf32>
      %20 = arith.maximumf %18, %19 : vector<8x128xf32>
      %21 = arith.truncf %20 : vector<8x128xf32> to vector<8x128xbf16>
      %c0_17 = arith.constant 0 : index
      %c0_18 = arith.constant 0 : index
      %22 = vector.load %arg7[%c0_17, %c0_18] : memref<8x128xbf16, #tpu.memory_space<vmem>>, vector<8x128xbf16>
      tpu.vector_store %arg7[%c0_17, %c0_18], %21 {strides = array<i32>} : memref<8x128xbf16, #tpu.memory_space<vmem>>, vector<8x128xbf16>,
    } else {
    }
    return
  }
  func.func @transform_0(%arg0: i32, %arg1: i32, %arg2: i32) -> (i32, i32) {
    %c0_i32 = arith.constant 0 : i32
    return %arg0, %arg2 : i32, i32
  }
  func.func @transform_1(%arg0: i32, %arg1: i32, %arg2: i32) -> (i32, i32) {
    %c0_i32 = arith.constant 0 : i32
    return %arg2, %arg1 : i32, i32
  }
  func.func @transform_2(%arg0: i32, %arg1: i32, %arg2: i32) -> (i32, i32) {
    %c0_i32 = arith.constant 0 : i32
    %c0_i32_0 = arith.constant 0 : i32
    return %c0_i32, %arg1 : i32, i32
  }
  func.func @transform_3(%arg0: i32, %arg1: i32, %arg2: i32) -> (i32, i32) {
    %c0_i32 = arith.constant 0 : i32
    %c0_i32_0 = arith.constant 0 : i32
    return %c0_i32, %arg1 : i32, i32
  }
  func.func @transform_4(%arg0: i32, %arg1: i32, %arg2: i32) -> (i32, i32) {
    %c0_i32 = arith.constant 0 : i32
    return %arg0, %arg1 : i32, i32
  }
}

module attributes {stable_mosaic.version = 11 : i64} {
  func.func @_gemm_res_kernel(%arg0: i32, %arg1: i32, %arg2: i32, %arg3: memref<8x256xbf16, #tpu.memory_space<vmem>>, %arg4: memref<256x128xbf16, #tpu.memory_space<vmem>>, %arg5: memref<1x128xf32, #tpu.memory_space<vmem>>, %arg6: memref<1x128xf32, #tpu.memory_space<vmem>>, %arg7: memref<8x128xbf16, #tpu.memory_space<vmem>>, %arg8: memref<8x128xbf16, #tpu.memory_space<vmem>>, %arg9: memref<8x128xf32, #tpu.memory_space<vmem>>) attributes {dimension_semantics = [#tpu.dimension_semantics<parallel>, #tpu.dimension_semantics<parallel>, #tpu.dimension_semantics<arbitrary>], iteration_bounds = array<i64: 1, 1, 1>, scalar_prefetch = 0 : i64, scratch_operands = 1 : i64, tpu.core_type = #tpu.core_type<tc>, window_params = [{transform_indices = @transform_0, window_bounds = array<i64: 8, 256>}, {transform_indices = @transform_1, window_bounds = array<i64: 256, 128>}, {transform_indices = @transform_2, window_bounds = array<i64: 1, 128>}, {transform_indices = @transform_3, window_bounds = array<i64: 1, 128>}, {transform_indices = @transform_4, window_bounds = array<i64: 8, 128>}, {transform_indices = @transform_5, window_bounds = array<i64: 8, 128>}]} {
    %c0_i32 = arith.constant 0 : i32
    %0 = arith.cmpi eq, %arg2, %c0_i32 : i32
    %1 = arith.extui %0 : i1 to i32
    %c0_i32_0 = arith.constant 0 : i32
    %2 = arith.cmpi ne, %1, %c0_i32_0 : i32
    scf.if %2 {
      %cst_10 = arith.constant 0.000000e+00 : f32
      %12 = vector.broadcast %cst_10 : f32 to vector<8x128xf32>
      %c0_11 = arith.constant 0 : index
      %c0_12 = arith.constant 0 : index
      %13 = vector.load %arg9[%c0_11, %c0_12] : memref<8x128xf32, #tpu.memory_space<vmem>>, vector<8x128xf32>
      tpu.vector_store %arg9[%c0_11, %c0_12], %12 {strides = array<i32>} : memref<8x128xf32, #tpu.memory_space<vmem>>, vector<8x128xf32>,
    } else {
    }
    %c0 = arith.constant 0 : index
    %c0_1 = arith.constant 0 : index
    %3 = vector.load %arg9[%c0, %c0_1] : memref<8x128xf32, #tpu.memory_space<vmem>>, vector<8x128xf32>
    %c0_2 = arith.constant 0 : index
    %c0_3 = arith.constant 0 : index
    %4 = vector.load %arg3[%c0_2, %c0_3] : memref<8x256xbf16, #tpu.memory_space<vmem>>, vector<8x256xbf16>
    %c0_4 = arith.constant 0 : index
    %c0_5 = arith.constant 0 : index
    %5 = vector.load %arg4[%c0_4, %c0_5] : memref<256x128xbf16, #tpu.memory_space<vmem>>, vector<256x128xbf16>
    %cst = arith.constant dense<0.000000e+00> : vector<8x128xf32>
    %6 = tpu.matmul %4, %5, %cst {dimension_numbers = #tpu.dot_dimension_numbers<[1], [0], [0], [1], [0, 0, 1, 1], [], []>} : vector<8x256xbf16>, vector<256x128xbf16>, vector<8x128xf32> -> vector<8x128xf32>
    %7 = arith.addf %3, %6 : vector<8x128xf32>
    %c0_6 = arith.constant 0 : index
    %c0_7 = arith.constant 0 : index
    %8 = vector.load %arg9[%c0_6, %c0_7] : memref<8x128xf32, #tpu.memory_space<vmem>>, vector<8x128xf32>
    tpu.vector_store %arg9[%c0_6, %c0_7], %7 {strides = array<i32>} : memref<8x128xf32, #tpu.memory_space<vmem>>, vector<8x128xf32>,
    %c0_i32_8 = arith.constant 0 : i32
    %9 = arith.cmpi eq, %arg2, %c0_i32_8 : i32
    %10 = arith.extui %9 : i1 to i32
    %c0_i32_9 = arith.constant 0 : i32
    %11 = arith.cmpi ne, %10, %c0_i32_9 : i32
    scf.if %11 {
      %c0_10 = arith.constant 0 : index
      %c0_11 = arith.constant 0 : index
      %12 = vector.load %arg9[%c0_10, %c0_11] : memref<8x128xf32, #tpu.memory_space<vmem>>, vector<8x128xf32>
      %c0_12 = arith.constant 0 : index
      %c0_13 = arith.constant 0 : index
      %13 = vector.load %arg5[%c0_12, %c0_13] : memref<1x128xf32, #tpu.memory_space<vmem>>, vector<1x128xf32>
      %14 = vector.broadcast %13 : vector<1x128xf32> to vector<8x128xf32>
      %15 = arith.mulf %12, %14 : vector<8x128xf32>
      %c0_14 = arith.constant 0 : index
      %c0_15 = arith.constant 0 : index
      %16 = vector.load %arg6[%c0_14, %c0_15] : memref<1x128xf32, #tpu.memory_space<vmem>>, vector<1x128xf32>
      %17 = vector.broadcast %16 : vector<1x128xf32> to vector<8x128xf32>
      %18 = arith.addf %15, %17 : vector<8x128xf32>
      %c0_16 = arith.constant 0 : index
      %c0_17 = arith.constant 0 : index
      %19 = vector.load %arg7[%c0_16, %c0_17] : memref<8x128xbf16, #tpu.memory_space<vmem>>, vector<8x128xbf16>
      %20 = arith.extf %19 : vector<8x128xbf16> to vector<8x128xf32>
      %21 = arith.addf %18, %20 : vector<8x128xf32>
      %cst_18 = arith.constant 0.000000e+00 : f32
      %22 = vector.broadcast %cst_18 : f32 to vector<8x128xf32>
      %23 = arith.maximumf %21, %22 : vector<8x128xf32>
      %24 = arith.truncf %23 : vector<8x128xf32> to vector<8x128xbf16>
      %c0_19 = arith.constant 0 : index
      %c0_20 = arith.constant 0 : index
      %25 = vector.load %arg8[%c0_19, %c0_20] : memref<8x128xbf16, #tpu.memory_space<vmem>>, vector<8x128xbf16>
      tpu.vector_store %arg8[%c0_19, %c0_20], %24 {strides = array<i32>} : memref<8x128xbf16, #tpu.memory_space<vmem>>, vector<8x128xbf16>,
    } else {
    }
    return
  }
  func.func @transform_0(%arg0: i32, %arg1: i32, %arg2: i32) -> (i32, i32) {
    %c0_i32 = arith.constant 0 : i32
    return %arg0, %arg2 : i32, i32
  }
  func.func @transform_1(%arg0: i32, %arg1: i32, %arg2: i32) -> (i32, i32) {
    %c0_i32 = arith.constant 0 : i32
    return %arg2, %arg1 : i32, i32
  }
  func.func @transform_2(%arg0: i32, %arg1: i32, %arg2: i32) -> (i32, i32) {
    %c0_i32 = arith.constant 0 : i32
    %c0_i32_0 = arith.constant 0 : i32
    return %c0_i32, %arg1 : i32, i32
  }
  func.func @transform_3(%arg0: i32, %arg1: i32, %arg2: i32) -> (i32, i32) {
    %c0_i32 = arith.constant 0 : i32
    %c0_i32_0 = arith.constant 0 : i32
    return %c0_i32, %arg1 : i32, i32
  }
  func.func @transform_4(%arg0: i32, %arg1: i32, %arg2: i32) -> (i32, i32) {
    %c0_i32 = arith.constant 0 : i32
    return %arg0, %arg1 : i32, i32
  }
  func.func @transform_5(%arg0: i32, %arg1: i32, %arg2: i32) -> (i32, i32) {
    %c0_i32 = arith.constant 0 : i32
    return %arg0, %arg1 : i32, i32
  }
}

module attributes {stable_mosaic.version = 11 : i64} {
  func.func @_gemm_kernel(%arg0: i32, %arg1: i32, %arg2: i32, %arg3: memref<8x128xbf16, #tpu.memory_space<vmem>>, %arg4: memref<128x128xbf16, #tpu.memory_space<vmem>>, %arg5: memref<1x128xf32, #tpu.memory_space<vmem>>, %arg6: memref<1x128xf32, #tpu.memory_space<vmem>>, %arg7: memref<8x128xbf16, #tpu.memory_space<vmem>>, %arg8: memref<8x128xf32, #tpu.memory_space<vmem>>) attributes {dimension_semantics = [#tpu.dimension_semantics<parallel>, #tpu.dimension_semantics<parallel>, #tpu.dimension_semantics<arbitrary>], iteration_bounds = array<i64: 1, 1, 1>, scalar_prefetch = 0 : i64, scratch_operands = 1 : i64, tpu.core_type = #tpu.core_type<tc>, window_params = [{transform_indices = @transform_0, window_bounds = array<i64: 8, 128>}, {transform_indices = @transform_1, window_bounds = array<i64: 128, 128>}, {transform_indices = @transform_2, window_bounds = array<i64: 1, 128>}, {transform_indices = @transform_3, window_bounds = array<i64: 1, 128>}, {transform_indices = @transform_4, window_bounds = array<i64: 8, 128>}]} {
    %c0_i32 = arith.constant 0 : i32
    %0 = arith.cmpi eq, %arg2, %c0_i32 : i32
    %1 = arith.extui %0 : i1 to i32
    %c0_i32_0 = arith.constant 0 : i32
    %2 = arith.cmpi ne, %1, %c0_i32_0 : i32
    scf.if %2 {
      %cst_10 = arith.constant 0.000000e+00 : f32
      %12 = vector.broadcast %cst_10 : f32 to vector<8x128xf32>
      %c0_11 = arith.constant 0 : index
      %c0_12 = arith.constant 0 : index
      %13 = vector.load %arg8[%c0_11, %c0_12] : memref<8x128xf32, #tpu.memory_space<vmem>>, vector<8x128xf32>
      tpu.vector_store %arg8[%c0_11, %c0_12], %12 {strides = array<i32>} : memref<8x128xf32, #tpu.memory_space<vmem>>, vector<8x128xf32>,
    } else {
    }
    %c0 = arith.constant 0 : index
    %c0_1 = arith.constant 0 : index
    %3 = vector.load %arg8[%c0, %c0_1] : memref<8x128xf32, #tpu.memory_space<vmem>>, vector<8x128xf32>
    %c0_2 = arith.constant 0 : index
    %c0_3 = arith.constant 0 : index
    %4 = vector.load %arg3[%c0_2, %c0_3] : memref<8x128xbf16, #tpu.memory_space<vmem>>, vector<8x128xbf16>
    %c0_4 = arith.constant 0 : index
    %c0_5 = arith.constant 0 : index
    %5 = vector.load %arg4[%c0_4, %c0_5] : memref<128x128xbf16, #tpu.memory_space<vmem>>, vector<128x128xbf16>
    %cst = arith.constant dense<0.000000e+00> : vector<8x128xf32>
    %6 = tpu.matmul %4, %5, %cst {dimension_numbers = #tpu.dot_dimension_numbers<[1], [0], [0], [1], [0, 0, 1, 1], [], []>} : vector<8x128xbf16>, vector<128x128xbf16>, vector<8x128xf32> -> vector<8x128xf32>
    %7 = arith.addf %3, %6 : vector<8x128xf32>
    %c0_6 = arith.constant 0 : index
    %c0_7 = arith.constant 0 : index
    %8 = vector.load %arg8[%c0_6, %c0_7] : memref<8x128xf32, #tpu.memory_space<vmem>>, vector<8x128xf32>
    tpu.vector_store %arg8[%c0_6, %c0_7], %7 {strides = array<i32>} : memref<8x128xf32, #tpu.memory_space<vmem>>, vector<8x128xf32>,
    %c0_i32_8 = arith.constant 0 : i32
    %9 = arith.cmpi eq, %arg2, %c0_i32_8 : i32
    %10 = arith.extui %9 : i1 to i32
    %c0_i32_9 = arith.constant 0 : i32
    %11 = arith.cmpi ne, %10, %c0_i32_9 : i32
    scf.if %11 {
      %c0_10 = arith.constant 0 : index
      %c0_11 = arith.constant 0 : index
      %12 = vector.load %arg8[%c0_10, %c0_11] : memref<8x128xf32, #tpu.memory_space<vmem>>, vector<8x128xf32>
      %c0_12 = arith.constant 0 : index
      %c0_13 = arith.constant 0 : index
      %13 = vector.load %arg5[%c0_12, %c0_13] : memref<1x128xf32, #tpu.memory_space<vmem>>, vector<1x128xf32>
      %14 = vector.broadcast %13 : vector<1x128xf32> to vector<8x128xf32>
      %15 = arith.mulf %12, %14 : vector<8x128xf32>
      %c0_14 = arith.constant 0 : index
      %c0_15 = arith.constant 0 : index
      %16 = vector.load %arg6[%c0_14, %c0_15] : memref<1x128xf32, #tpu.memory_space<vmem>>, vector<1x128xf32>
      %17 = vector.broadcast %16 : vector<1x128xf32> to vector<8x128xf32>
      %18 = arith.addf %15, %17 : vector<8x128xf32>
      %19 = arith.truncf %18 : vector<8x128xf32> to vector<8x128xbf16>
      %c0_16 = arith.constant 0 : index
      %c0_17 = arith.constant 0 : index
      %20 = vector.load %arg7[%c0_16, %c0_17] : memref<8x128xbf16, #tpu.memory_space<vmem>>, vector<8x128xbf16>
      tpu.vector_store %arg7[%c0_16, %c0_17], %19 {strides = array<i32>} : memref<8x128xbf16, #tpu.memory_space<vmem>>, vector<8x128xbf16>,
    } else {
    }
    return
  }
  func.func @transform_0(%arg0: i32, %arg1: i32, %arg2: i32) -> (i32, i32) {
    %c0_i32 = arith.constant 0 : i32
    return %arg0, %arg2 : i32, i32
  }
  func.func @transform_1(%arg0: i32, %arg1: i32, %arg2: i32) -> (i32, i32) {
    %c0_i32 = arith.constant 0 : i32
    return %arg2, %arg1 : i32, i32
  }
  func.func @transform_2(%arg0: i32, %arg1: i32, %arg2: i32) -> (i32, i32) {
    %c0_i32 = arith.constant 0 : i32
    %c0_i32_0 = arith.constant 0 : i32
    return %c0_i32, %arg1 : i32, i32
  }
  func.func @transform_3(%arg0: i32, %arg1: i32, %arg2: i32) -> (i32, i32) {
    %c0_i32 = arith.constant 0 : i32
    %c0_i32_0 = arith.constant 0 : i32
    return %c0_i32, %arg1 : i32, i32
  }
  func.func @transform_4(%arg0: i32, %arg1: i32, %arg2: i32) -> (i32, i32) {
    %c0_i32 = arith.constant 0 : i32
    return %arg0, %arg1 : i32, i32
  }
}

module attributes {stable_mosaic.version = 11 : i64} {
  func.func @_tail_kernel(%arg0: i32, %arg1: memref<1x8x128xbf16, #tpu.memory_space<vmem>>, %arg2: memref<128x128xf32, #tpu.memory_space<vmem>>, %arg3: memref<1x128xf32, #tpu.memory_space<vmem>>, %arg4: memref<1x1x128xf32, #tpu.memory_space<vmem>>, %arg5: memref<1x1x128xf32, #tpu.memory_space<vmem>>) attributes {dimension_semantics = [#tpu.dimension_semantics<parallel>], iteration_bounds = array<i64: 2>, scalar_prefetch = 0 : i64, scratch_operands = 0 : i64, tpu.core_type = #tpu.core_type<tc>, window_params = [{transform_indices = @transform_0, window_bounds = array<i64: 1, 8, 128>}, {pipeline_mode = #tpu.pipeline_mode<synchronous>, transform_indices = @transform_1, window_bounds = array<i64: 128, 128>}, {pipeline_mode = #tpu.pipeline_mode<synchronous>, transform_indices = @transform_2, window_bounds = array<i64: 1, 128>}, {transform_indices = @transform_3, window_bounds = array<i64: 1, 1, 128>}, {transform_indices = @transform_4, window_bounds = array<i64: 1, 1, 128>}]} {
    %c0 = arith.constant 0 : index
    %c0_0 = arith.constant 0 : index
    %c0_1 = arith.constant 0 : index
    %0 = vector.load %arg1[%c0, %c0_0, %c0_1] : memref<1x8x128xbf16, #tpu.memory_space<vmem>>, vector<1x8x128xbf16>
    %1 = vector.shape_cast %0 : vector<1x8x128xbf16> to vector<8x128xbf16>
    %2 = arith.extf %1 : vector<8x128xbf16> to vector<8x128xf32>
    %cst = arith.constant dense<0.000000e+00> : vector<128xf32>
    %3 = vector.multi_reduction <add>, %2, %cst [0] : vector<8x128xf32> to vector<128xf32>
    %4 = vector.shape_cast %3 : vector<128xf32> to vector<1x128xf32>
    %cst_2 = arith.constant 2.500000e-01 : f32
    %5 = vector.broadcast %cst_2 : f32 to vector<1x128xf32>
    %6 = arith.mulf %4, %5 : vector<1x128xf32>
    %c0_3 = arith.constant 0 : index
    %c0_4 = arith.constant 0 : index
    %c0_5 = arith.constant 0 : index
    %7 = vector.load %arg4[%c0_3, %c0_4, %c0_5] : memref<1x1x128xf32, #tpu.memory_space<vmem>>, vector<1x1x128xf32>
    %8 = vector.shape_cast %7 : vector<1x1x128xf32> to vector<1x128xf32>
    %9 = vector.shape_cast %6 : vector<1x128xf32> to vector<1x1x128xf32>
    tpu.vector_store %arg4[%c0_3, %c0_4, %c0_5], %9 {strides = array<i32>} : memref<1x1x128xf32, #tpu.memory_space<vmem>>, vector<1x1x128xf32>,
    %c0_6 = arith.constant 0 : index
    %c0_7 = arith.constant 0 : index
    %10 = vector.load %arg2[%c0_6, %c0_7] : memref<128x128xf32, #tpu.memory_space<vmem>>, vector<128x128xf32>
    %cst_8 = arith.constant dense<0.000000e+00> : vector<1x128xf32>
    %11 = tpu.matmul %6, %10, %cst_8 {dimension_numbers = #tpu.dot_dimension_numbers<[1], [0], [0], [1], [0, 0, 1, 1], [], []>} : vector<1x128xf32>, vector<128x128xf32>, vector<1x128xf32> -> vector<1x128xf32>
    %c0_9 = arith.constant 0 : index
    %c0_10 = arith.constant 0 : index
    %12 = vector.load %arg3[%c0_9, %c0_10] : memref<1x128xf32, #tpu.memory_space<vmem>>, vector<1x128xf32>
    %13 = arith.addf %11, %12 : vector<1x128xf32>
    %c0_11 = arith.constant 0 : index
    %c0_12 = arith.constant 0 : index
    %c0_13 = arith.constant 0 : index
    %14 = vector.load %arg5[%c0_11, %c0_12, %c0_13] : memref<1x1x128xf32, #tpu.memory_space<vmem>>, vector<1x1x128xf32>
    %15 = vector.shape_cast %14 : vector<1x1x128xf32> to vector<1x128xf32>
    %16 = vector.shape_cast %13 : vector<1x128xf32> to vector<1x1x128xf32>
    tpu.vector_store %arg5[%c0_11, %c0_12, %c0_13], %16 {strides = array<i32>} : memref<1x1x128xf32, #tpu.memory_space<vmem>>, vector<1x1x128xf32>,
    return
  }
  func.func @transform_0(%arg0: i32) -> (i32, i32, i32) {
    %c0_i32 = arith.constant 0 : i32
    %c0_i32_0 = arith.constant 0 : i32
    %c0_i32_1 = arith.constant 0 : i32
    return %arg0, %c0_i32, %c0_i32_0 : i32, i32, i32
  }
  func.func @transform_1(%arg0: i32) -> (i32, i32) {
    %c0_i32 = arith.constant 0 : i32
    %c0_i32_0 = arith.constant 0 : i32
    %c0_i32_1 = arith.constant 0 : i32
    return %c0_i32, %c0_i32_0 : i32, i32
  }
  func.func @transform_2(%arg0: i32) -> (i32, i32) {
    %c0_i32 = arith.constant 0 : i32
    %c0_i32_0 = arith.constant 0 : i32
    %c0_i32_1 = arith.constant 0 : i32
    return %c0_i32, %c0_i32_0 : i32, i32
  }
  func.func @transform_3(%arg0: i32) -> (i32, i32, i32) {
    %c0_i32 = arith.constant 0 : i32
    %c0_i32_0 = arith.constant 0 : i32
    %c0_i32_1 = arith.constant 0 : i32
    return %arg0, %c0_i32, %c0_i32_0 : i32, i32, i32
  }
  func.func @transform_4(%arg0: i32) -> (i32, i32, i32) {
    %c0_i32 = arith.constant 0 : i32
    %c0_i32_0 = arith.constant 0 : i32
    %c0_i32_1 = arith.constant 0 : i32
    return %arg0, %c0_i32, %c0_i32_0 : i32, i32, i32
  }
}

</mosaic_0001>

<bundles_post_ra>
// kernel: _resnet_forward.8
= control target key start
LH: loop header
LB: loop body
LE: loop exit
PB: predicated region body
PF: predicated region fallthrough
CT: control target
= control target key end

     0   :  { %s992_s1 = inlined_call_operand.vmem [shape: bf16[256,128], index: 1, kind: input, shape index: {}]   ;;  %s993_s0 = inlined_call_operand.vmem [shape: bf16[128,256], index: 0, kind: input, shape index: {}]   ;;  %s994_s2 = inlined_call_operand.vmem [shape: f32[1,128], index: 2, kind: input, shape index: {}]   ;;  %s995_s3 = inlined_call_operand.vmem [shape: f32[1,128], index: 3, kind: input, shape index: {}]   ;;  %s996_s4 = inlined_call_operand.vmem [shape: bf16[128,128], index: 4, kind: output, shape index: {}]  }
   0x1   :  { %v765_v0 = vld [vmem:[%s992_s1 + $0x78] sm:$0xff]   ;;  %v767_v2 = vld [vmem:[%s992_s1 + $0x70] sm:$0xff]   ;;  %v769_v4 = vld [vmem:[%s992_s1 + $0x68] sm:$0xff]  }
   0x2   :  { %v766_v1 = vld [vmem:[%s992_s1 + $0x38] sm:$0xff]   ;;  %685 = vmatprep.subr.bf16.mxu0 %v765_v0  ;;  %749 = vmatprep.subr.bf16.mxu1 %v765_v0  ;;  %v768_v3 = vld [vmem:[%s992_s1 + $0x30] sm:$0xff]   ;;  %v770_v5 = vld [vmem:[%s992_s1 + $0x28] sm:$0xff]  }
   0x3   :  { %686 = vmatpush3.bf16.msra.mxu0 %v766_v1  ;;  %757 = vmatpush3.bf16.msra.mxu1 %v766_v1  ;;  %v771_v6 = vld [vmem:[%s992_s1 + $0x60] sm:$0xff]   ;;  %v773_v8 = vld [vmem:[%s992_s1 + $0x58] sm:$0xff]   ;;  %v775_v10 = vld [vmem:[%s992_s1 + $0x50] sm:$0xff]  }
   0x4   :  { %687 = vmatprep.subr.bf16.mxu0 %v767_v2  ;;  %750 = vmatprep.subr.bf16.mxu1 %v767_v2  ;;  %v772_v7 = vld [vmem:[%s992_s1 + $0x20] sm:$0xff]   ;;  %v774_v9 = vld [vmem:[%s992_s1 + $0x18] sm:$0xff]   ;;  %v776_v13 = vld [vmem:[%s992_s1 + $0x10] sm:$0xff]  }
   0x5   :  { %v783_v11 = vld [vmem:[%s993_s0 + $0x4] ss:$8 sps:$4 sm:$0xff]   ;;  %v781_v18 = vld [vmem:[%s993_s0] ss:$8 sps:$4 sm:$0xff]   ;;  %v787_v20 = vld [vmem:[%s993_s0 + $0x14] ss:$8 sps:$4 sm:$0xff]  }
   0x6   :  { %v786_v12 = vld [vmem:[%s993_s0 + $0x44] ss:$8 sps:$4 sm:$0xff]   ;;  %310 = vmatprep.mubr.bf16.mxu0 %v783_v11  ;;  %v784_v19 = vld [vmem:[%s993_s0 + $0x40] ss:$8 sps:$4 sm:$0xff]   ;;  %v789_v21 = vld [vmem:[%s993_s0 + $0x54] ss:$8 sps:$4 sm:$0xff]  }
   0x7   :  { %688 = vmatpush3.bf16.msra.mxu0 %v768_v3  ;;  %758 = vmatpush3.bf16.msra.mxu1 %v768_v3  ;;  %v777_v14 = vld [vmem:[%s992_s1 + $0x48] sm:$0xff]   ;;  %v779_v16 = vld [vmem:[%s992_s1 + $0x40] sm:$0xff]   ;;  %v791_v22 = vld [vmem:[%s993_s0 + $0x10] ss:$8 sps:$4 sm:$0xff]  }
   0x8   :  { %689 = vmatprep.subr.bf16.mxu0 %v769_v4  ;;  %751 = vmatprep.subr.bf16.mxu1 %v769_v4  ;;  %v778_v15 = vld [vmem:[%s992_s1 + $0x8] sm:$0xff]   ;;  %v780_v17 = vld [vmem:[%s992_s1] sm:$0xff]   ;;  %v792_v23 = vld [vmem:[%s993_s0 + $0x50] ss:$8 sps:$4 sm:$0xff]  }
   0x9   :  { %342 = vmatprep.mubr.bf16.mxu1 %v786_v12  ;;  %v793_v24 = vld [vmem:[%s993_s0 + $0x24] ss:$8 sps:$4 sm:$0xff]   ;;  %v797_v26 = vld [vmem:[%s993_s0 + $0x20] ss:$8 sps:$4 sm:$0xff]   ;;  %v799_v28 = vld [vmem:[%s993_s0 + $0x34] ss:$8 sps:$4 sm:$0xff]  }
   0xa   :  { %v795_v25 = vld [vmem:[%s993_s0 + $0x64] ss:$8 sps:$4 sm:$0xff]   ;;  %v798_v27 = vld [vmem:[%s993_s0 + $0x60] ss:$8 sps:$4 sm:$0xff]   ;;  %v801_v29 = vld [vmem:[%s993_s0 + $0x74] ss:$8 sps:$4 sm:$0xff]  }
   0xb   :  { %690 = vmatpush3.bf16.msra.mxu0 %v770_v5  ;;  %759 = vmatpush3.bf16.msra.mxu1 %v770_v5  ;;  %v803_v30 = vld [vmem:[%s993_s0 + $0x30] ss:$8 sps:$4 sm:$0xff]   ;;  %v929_v35 = vld [vmem:[%s994_s2] ss:$0 sm:$0xff] }
   0xc   :  { %691 = vmatprep.subr.bf16.mxu0 %v771_v6  ;;  %752 = vmatprep.subr.bf16.mxu1 %v771_v6  ;;  %v804_v31 = vld [vmem:[%s993_s0 + $0x70] ss:$8 sps:$4 sm:$0xff]   ;;  %v936_v43 = vld [vmem:[%s995_s3] ss:$0 sm:$0xff] }
   0xf   :  { %692 = vmatpush3.bf16.msra.mxu0 %v772_v7  ;;  %760 = vmatpush3.bf16.msra.mxu1 %v772_v7 }
  0x10   :  { %693 = vmatprep.subr.bf16.mxu0 %v773_v8  ;;  %753 = vmatprep.subr.bf16.mxu1 %v773_v8 }
  0x13   :  { %694 = vmatpush3.bf16.msra.mxu0 %v774_v9  ;;  %761 = vmatpush3.bf16.msra.mxu1 %v774_v9 }
  0x14   :  { %695 = vmatprep.subr.bf16.mxu0 %v775_v10  ;;  %754 = vmatprep.subr.bf16.mxu1 %v775_v10 }
  0x17   :  { %696 = vmatpush3.bf16.msra.mxu0 %v776_v13  ;;  %762 = vmatpush3.bf16.msra.mxu1 %v776_v13 }
  0x18   :  { %697 = vmatprep.subr.bf16.mxu0 %v777_v14  ;;  %755 = vmatprep.subr.bf16.mxu1 %v777_v14 }
  0x1b   :  { %698 = vmatpush3.bf16.msra.mxu0 %v778_v15  ;;  %763 = vmatpush3.bf16.msra.mxu1 %v778_v15 }
  0x1c   :  { %699 = vmatprep.subr.bf16.mxu0 %v779_v16  ;;  %756 = vmatprep.subr.bf16.mxu1 %v779_v16 }
  0x1f   :  { %700 = vmatpush3.bf16.msra.mxu0 %v780_v17  ;;  %764 = vmatpush3.bf16.msra.mxu1 %v780_v17 }
  0x22   :  { %311 = vmatmul.mubr.bf16.vlgmr.msra.gmra.mxu0 %v781_v18  ;;  %343 = vmatmul.mubr.bf16.vlgmr.msra.gmra.mxu1 %v784_v19 }
  0x23   :  { %318 = vmatprep.mubr.bf16.mxu0 %v787_v20  ;;  %350 = vmatprep.mubr.bf16.mxu1 %v789_v21 }
  0x2a   :  { %319 = vmatmul.mubr.bf16.gmra.mxu0 %v791_v22  ;;  %351 = vmatmul.mubr.bf16.gmra.mxu1 %v792_v23 }
  0x2b   :  { %326 = vmatprep.mubr.bf16.mxu0 %v793_v24  ;;  %358 = vmatprep.mubr.bf16.mxu1 %v795_v25 }
  0x32   :  { %327 = vmatmul.mubr.bf16.gmra.mxu0 %v797_v26  ;;  %359 = vmatmul.mubr.bf16.gmra.mxu1 %v798_v27 }
  0x33   :  { %334 = vmatprep.mubr.bf16.mxu0 %v799_v28  ;;  %366 = vmatprep.mubr.bf16.mxu1 %v801_v29 }
  0x3a   :  { %335 = vmatmul.mubr.bf16.gmra.mxu0 %v803_v30  ;;  %367 = vmatmul.mubr.bf16.gmra.mxu1 %v804_v31 }
  0xe2   :  { %v701_v32 = vpop.f32.mrf.mxu0  ;;  %v725_v33 = vpop.f32.mrf.mxu1 }
  0xe4   :  { %v702_v34 = vpop.f32.mrf.mxu0  ;;  %v726_v36 = vpop.f32.mrf.mxu1 }
  0xe5   :  { %v703_v37 = vadd.f32 %v702_v34, %v701_v32  ;;  %v727_v38 = vadd.f32 %v726_v36, %v725_v33 }
  0xe6   :  { %v704_v39 = vpop.f32.mrf.mxu0  ;;  %v728_v40 = vpop.f32.mrf.mxu1 }
  0xe7   :  { %v433_v41 = vmul.f32 %v703_v37, %v929_v35  ;;  %v441_v42 = vmul.f32 %v727_v38, %v929_v35 }
  0xe8   :  { %v705_v44 = vpop.f32.mrf.mxu0  ;;  %v729_v45 = vpop.f32.mrf.mxu1 }
  0xe9   :  { %v706_v46 = vadd.f32 %v705_v44, %v704_v39  ;;  %v730_v47 = vadd.f32 %v729_v45, %v728_v40  ;;  %v456_v50 = vadd.f32 %v936_v43, %v433_v41  ;;  %v464_v51 = vadd.f32 %v936_v43, %v441_v42 }
  0xea   :  { %v707_v48 = vpop.f32.mrf.mxu0  ;;  %v731_v49 = vpop.f32.mrf.mxu1 }
  0xeb   :  { %v434_v52 = vmul.f32 %v706_v46, %v929_v35  ;;  %v442_v53 = vmul.f32 %v730_v47, %v929_v35  ;;  %v472_v62 = vmax.f32 %v456_v50, 0.0  ;;  %v480_v63 = vmax.f32 %v464_v51, 0.0 }
  0xec   :  { %v708_v54 = vpop.f32.mrf.mxu0  ;;  %v732_v55 = vpop.f32.mrf.mxu1 }
  0xed   :  { %v457_v56 = vadd.f32 %v936_v43, %v434_v52  ;;  %v465_v57 = vadd.f32 %v936_v43, %v442_v53  ;;  %v709_v58 = vadd.f32 %v708_v54, %v707_v48  ;;  %v733_v59 = vadd.f32 %v732_v55, %v731_v49 }
  0xee   :  { %v710_v60 = vpop.f32.mrf.mxu0  ;;  %v734_v61 = vpop.f32.mrf.mxu1 }
  0xef   :  { %v473_v0 = vmax.f32 %v457_v56, 0.0  ;;  %v481_v1 = vmax.f32 %v465_v57, 0.0  ;;  %v435_v2 = vmul.f32 %v709_v58, %v929_v35  ;;  %v443_v3 = vmul.f32 %v733_v59, %v929_v35 }
  0xf0   :  { %v711_v4 = vpop.f32.mrf.mxu0  ;;  %v735_v5 = vpop.f32.mrf.mxu1 }
  0xf1   :  { %v641_v6 = vpack.c.bf16 %v473_v0, %v472_v62  ;;  %v661_v7 = vpack.c.bf16 %v481_v1, %v480_v63  ;;  %v712_v8 = vadd.f32 %v711_v4, %v710_v60  ;;  %v736_v9 = vadd.f32 %v735_v5, %v734_v61 }
  0xf2   :  { %v713_v10 = vpop.f32.mrf.mxu0  ;;  %v737_v11 = vpop.f32.mrf.mxu1  ;;  %v458_v12 = vadd.f32 %v936_v43, %v435_v2  ;;  %v466_v13 = vadd.f32 %v936_v43, %v443_v3 }
  0xf3   :  { %642 = vst [vmem:[%s996_s4] sm:$0xff] %v641_v6   ;;  %681 = vst [vmem:[%s996_s4 + $0x20] sm:$0xff] %v661_v7   ;;  %v436_v14 = vmul.f32 %v712_v8, %v929_v35  ;;  %v444_v15 = vmul.f32 %v736_v9, %v929_v35 }
  0xf4   :  { %v714_v16 = vpop.f32.mrf.mxu0  ;;  %v738_v17 = vpop.f32.mrf.mxu1  ;;  %v474_v26 = vmax.f32 %v458_v12, 0.0  ;;  %v482_v27 = vmax.f32 %v466_v13, 0.0 }
  0xf5   :  { %v715_v18 = vadd.f32 %v714_v16, %v713_v10  ;;  %v739_v19 = vadd.f32 %v738_v17, %v737_v11  ;;  %v459_v20 = vadd.f32 %v936_v43, %v436_v14  ;;  %v467_v21 = vadd.f32 %v936_v43, %v444_v15 }
  0xf6   :  { %v716_v22 = vpop.f32.mrf.mxu0  ;;  %v740_v23 = vpop.f32.mrf.mxu1 }
  0xf7   :  { %v437_v24 = vmul.f32 %v715_v18, %v929_v35  ;;  %v445_v25 = vmul.f32 %v739_v19, %v929_v35  ;;  %v475_v28 = vmax.f32 %v459_v20, 0.0  ;;  %v483_v29 = vmax.f32 %v467_v21, 0.0 }
  0xf8   :  { %v717_v30 = vpop.f32.mrf.mxu0  ;;  %v741_v31 = vpop.f32.mrf.mxu1 }
  0xf9   :  { %v718_v32 = vadd.f32 %v717_v30, %v716_v22  ;;  %v742_v33 = vadd.f32 %v741_v31, %v740_v23  ;;  %v646_v34 = vpack.c.bf16 %v475_v28, %v474_v26  ;;  %v666_v36 = vpack.c.bf16 %v483_v29, %v482_v27 }
  0xfa   :  { %v719_v37 = vpop.f32.mrf.mxu0  ;;  %v743_v38 = vpop.f32.mrf.mxu1  ;;  %v460_v39 = vadd.f32 %v936_v43, %v437_v24  ;;  %v468_v40 = vadd.f32 %v936_v43, %v445_v25 }
  0xfb   :  { %v438_v41 = vmul.f32 %v718_v32, %v929_v35  ;;  %v446_v42 = vmul.f32 %v742_v33, %v929_v35  ;;  %678 = vst [vmem:[%s996_s4 + $0x8] sm:$0xff] %v646_v34   ;;  %682 = vst [vmem:[%s996_s4 + $0x28] sm:$0xff] %v666_v36  }
  0xfc   :  { %v720_v44 = vpop.f32.mrf.mxu0  ;;  %v744_v45 = vpop.f32.mrf.mxu1  ;;  %v476_v52 = vmax.f32 %v460_v39, 0.0  ;;  %v484_v53 = vmax.f32 %v468_v40, 0.0 }
  0xfd   :  { %v461_v46 = vadd.f32 %v936_v43, %v438_v41  ;;  %v469_v47 = vadd.f32 %v936_v43, %v446_v42  ;;  %v721_v48 = vadd.f32 %v720_v44, %v719_v37  ;;  %v745_v49 = vadd.f32 %v744_v45, %v743_v38 }
  0xfe   :  { %v722_v50 = vpop.f32.mrf.mxu0  ;;  %v746_v51 = vpop.f32.mrf.mxu1 }
  0xff   :  { %v477_v54 = vmax.f32 %v461_v46, 0.0  ;;  %v485_v55 = vmax.f32 %v469_v47, 0.0  ;;  %v439_v56 = vmul.f32 %v721_v48, %v929_v35  ;;  %v447_v57 = vmul.f32 %v745_v49, %v929_v35 }
 0x100   :  { %v723_v58 = vpop.f32.mrf.mxu0  ;;  %v747_v59 = vpop.f32.mrf.mxu1 }
 0x101   :  { %v651_v60 = vpack.c.bf16 %v477_v54, %v476_v52  ;;  %v671_v61 = vpack.c.bf16 %v485_v55, %v484_v53  ;;  %v724_v62 = vadd.f32 %v723_v58, %v722_v50  ;;  %v748_v63 = vadd.f32 %v747_v59, %v746_v51 }
 0x102   :  { %v462_v0 = vadd.f32 %v936_v43, %v439_v56  ;;  %v470_v1 = vadd.f32 %v936_v43, %v447_v57 }
 0x103   :  { %679 = vst [vmem:[%s996_s4 + $0x10] sm:$0xff] %v651_v60   ;;  %683 = vst [vmem:[%s996_s4 + $0x30] sm:$0xff] %v671_v61   ;;  %v440_v2 = vmul.f32 %v724_v62, %v929_v35  ;;  %v448_v3 = vmul.f32 %v748_v63, %v929_v35 }
 0x104   :  { %v478_v6 = vmax.f32 %v462_v0, 0.0  ;;  %v486_v7 = vmax.f32 %v470_v1, 0.0 }
 0x105   :  { %v463_v4 = vadd.f32 %v936_v43, %v440_v2  ;;  %v471_v5 = vadd.f32 %v936_v43, %v448_v3 }
 0x107   :  { %v479_v8 = vmax.f32 %v463_v4, 0.0  ;;  %v487_v9 = vmax.f32 %v471_v5, 0.0 }
 0x109   :  { %v656_v10 = vpack.c.bf16 %v479_v8, %v478_v6  ;;  %v676_v11 = vpack.c.bf16 %v487_v9, %v486_v7 }
 0x10b   :  { %680 = vst [vmem:[%s996_s4 + $0x18] sm:$0xff] %v656_v10   ;;  %684 = vst [vmem:[%s996_s4 + $0x38] sm:$0xff] %v676_v11  }

// kernel: _resnet_forward.9
= control target key start
LH: loop header
LB: loop body
LE: loop exit
PB: predicated region body
PF: predicated region fallthrough
CT: control target
= control target key end

     0   :  { %s145_s0 = inlined_call_operand.vmem [shape: bf16[9,16,128], index: 0, kind: input, shape index: {}]   ;;  %s146_s1 = inlined_call_operand.vmem [shape: bf16[16,128], index: 1, kind: output, shape index: {}]  }
   0x1   :  { %v8_v0 = vld [vmem:[%s145_s0] sm:$0xf]  ;;  %v9_v1 = vld [vmem:[%s145_s0 + $0x4] sm:$0xf]  ;;  %v56_v2 = vld [vmem:[%s145_s0 + $0x8] sm:$0xf] }
   0x2   :  { %v57_v3 = vld [vmem:[%s145_s0 + $0xc] sm:$0xf]  ;;  %v13_v4 = vmax.bf16 %v56_v2, %v8_v0  ;;  %v58_v5 = vld [vmem:[%s145_s0 + $0x10] sm:$0xf]  ;;  %v59_v6 = vld [vmem:[%s145_s0 + $0x14] sm:$0xf] }
   0x3   :  { %v14_v7 = vmax.bf16 %v57_v3, %v9_v1  ;;  %v60_v8 = vld [vmem:[%s145_s0 + $0x18] sm:$0xf]  ;;  %v61_v10 = vld [vmem:[%s145_s0 + $0x1c] sm:$0xf]  ;;  %v62_v12 = vld [vmem:[%s145_s0 + $0x20] sm:$0xf] }
   0x4   :  { %v18_v9 = vmax.bf16 %v58_v5, %v13_v4  ;;  %v63_v14 = vld [vmem:[%s145_s0 + $0x24] sm:$0xf]  ;;  %v64_v16 = vld [vmem:[%s145_s0 + $0x28] sm:$0xf]  ;;  %v65_v18 = vld [vmem:[%s145_s0 + $0x2c] sm:$0xf] }
   0x5   :  { %v19_v11 = vmax.bf16 %v59_v6, %v14_v7  ;;  %v66_v20 = vld [vmem:[%s145_s0 + $0x30] sm:$0xf]  ;;  %v67_v22 = vld [vmem:[%s145_s0 + $0x34] sm:$0xf]  ;;  %v68_v24 = vld [vmem:[%s145_s0 + $0x38] sm:$0xf] }
   0x6   :  { %v23_v13 = vmax.bf16 %v60_v8, %v18_v9  ;;  %v69_v26 = vld [vmem:[%s145_s0 + $0x3c] sm:$0xf]  ;;  %v70_v28 = vld [vmem:[%s145_s0 + $0x40] sm:$0xf]  ;;  %v71_v30 = vld [vmem:[%s145_s0 + $0x44] sm:$0xf] }
   0x7   :  { %v24_v15 = vmax.bf16 %v61_v10, %v19_v11 }
   0x8   :  { %v28_v17 = vmax.bf16 %v62_v12, %v23_v13 }
   0x9   :  { %v29_v19 = vmax.bf16 %v63_v14, %v24_v15 }
   0xa   :  { %v33_v21 = vmax.bf16 %v64_v16, %v28_v17 }
   0xb   :  { %v34_v23 = vmax.bf16 %v65_v18, %v29_v19 }
   0xc   :  { %v38_v25 = vmax.bf16 %v66_v20, %v33_v21 }
   0xd   :  { %v39_v27 = vmax.bf16 %v67_v22, %v34_v23 }
   0xe   :  { %v43_v29 = vmax.bf16 %v68_v24, %v38_v25 }
   0xf   :  { %v44_v31 = vmax.bf16 %v69_v26, %v39_v27 }
  0x10   :  { %v48_v32 = vmax.bf16 %v70_v28, %v43_v29 }
  0x11   :  { %v49_v33 = vmax.bf16 %v71_v30, %v44_v31 }
  0x13   :  { %v77_v34 = vcombine.low %v48_v32, %v49_v33 }
  0x15   :  { %76 = vst [vmem:[%s146_s1] sm:$0xff] %v77_v34  }

// kernel: _resnet_forward.10
= control target key start
LH: loop header
LB: loop body
LE: loop exit
PB: predicated region body
PF: predicated region fallthrough
CT: control target
= control target key end

     0   :  { %s362_s1 = inlined_call_operand.vmem [shape: bf16[128,128], index: 1, kind: input, shape index: {}]   ;;  %s363_s0 = inlined_call_operand.vmem [shape: bf16[32,128], index: 0, kind: input, shape index: {}]   ;;  %s364_s2 = inlined_call_operand.vmem [shape: f32[1,128], index: 2, kind: input, shape index: {}]   ;;  %s365_s3 = inlined_call_operand.vmem [shape: f32[1,128], index: 3, kind: input, shape index: {}]   ;;  %s366_s4 = inlined_call_operand.vmem [shape: bf16[32,128], index: 4, kind: output, shape index: {}]  }
   0x1   :  { %v285_v0 = vld [vmem:[%s362_s1 + $0x38] sm:$0xff]   ;;  %v286_v1 = vld [vmem:[%s362_s1 + $0x30] sm:$0xff]   ;;  %v287_v2 = vld [vmem:[%s362_s1 + $0x28] sm:$0xff]  }
   0x2   :  { %265 = vmatprep.subr.bf16.mxu0 %v285_v0  ;;  %v288_v3 = vld [vmem:[%s362_s1 + $0x20] sm:$0xff]   ;;  %v289_v5 = vld [vmem:[%s362_s1 + $0x18] sm:$0xff]   ;;  %v290_v6 = vld [vmem:[%s362_s1 + $0x10] sm:$0xff]  }
   0x3   :  { %266 = vmatpush3.bf16.msra.mxu0 %v285_v0  ;;  %v293_v4 = vld [vmem:[%s363_s0] sm:$0xff]   ;;  %v291_v7 = vld [vmem:[%s362_s1 + $0x8] sm:$0xff]  }
   0x4   :  { %267 = vmatprep.subr.bf16.mxu0 %v286_v1  ;;  %281 = vmatprep.mubr.bf16.mxu0 %v293_v4  ;;  %v292_v8 = vld [vmem:[%s362_s1] sm:$0xff]   ;;  %v294_v9 = vld [vmem:[%s363_s0 + $0x8] sm:$0xff]  }
   0x5   :  { %v234_v10 = vld [vmem:[%s364_s2] ss:$0 sm:$0xff] }
   0x6   :  { %v235_v13 = vld [vmem:[%s365_s3] ss:$0 sm:$0xff] }
   0x7   :  { %268 = vmatpush3.bf16.msra.mxu0 %v286_v1 }
   0x8   :  { %269 = vmatprep.subr.bf16.mxu0 %v287_v2 }
   0xb   :  { %270 = vmatpush3.bf16.msra.mxu0 %v287_v2 }
   0xc   :  { %271 = vmatprep.subr.bf16.mxu0 %v288_v3 }
   0xf   :  { %272 = vmatpush3.bf16.msra.mxu0 %v288_v3 }
  0x10   :  { %273 = vmatprep.subr.bf16.mxu0 %v289_v5 }
  0x13   :  { %274 = vmatpush3.bf16.msra.mxu0 %v289_v5 }
  0x14   :  { %275 = vmatprep.subr.bf16.mxu0 %v290_v6 }
  0x17   :  { %276 = vmatpush3.bf16.msra.mxu0 %v290_v6 }
  0x18   :  { %277 = vmatprep.subr.bf16.mxu0 %v291_v7 }
  0x1b   :  { %278 = vmatpush3.bf16.msra.mxu0 %v291_v7 }
  0x1c   :  { %279 = vmatprep.subr.bf16.mxu0 %v292_v8 }
  0x1f   :  { %280 = vmatpush3.bf16.msra.mxu0 %v292_v8 }
  0x22   :  { %282 = vmatmul.mubr.bf16.vlgmr.msra.gmra.mxu0 %v294_v9 }
  0xe2   :  { %v283_v11 = vpop.f32.mrf.mxu0 }
  0xe3   :  { %v183_v12 = vmul.f32 %v283_v11, %v234_v10 }
  0xe4   :  { %v144_v14 = vpop.f32.mrf.mxu0 }
  0xe5   :  { %v181_v15 = vmul.f32 %v234_v10, %v144_v14  ;;  %v194_v17 = vadd.f32 %v235_v13, %v183_v12 }
  0xe6   :  { %v284_v16 = vpop.f32.mrf.mxu0 }
  0xe7   :  { %v184_v18 = vmul.f32 %v284_v16, %v234_v10  ;;  %v192_v20 = vadd.f32 %v235_v13, %v181_v15  ;;  %v198_v23 = vmax.f32 %v194_v17, 0.0 }
  0xe8   :  { %v147_v19 = vpop.f32.mrf.mxu0 }
  0xe9   :  { %v195_v21 = vadd.f32 %v235_v13, %v184_v18  ;;  %v182_v22 = vmul.f32 %v234_v10, %v147_v19  ;;  %v196_v26 = vmax.f32 %v192_v20, 0.0 }
  0xeb   :  { %v199_v24 = vmax.f32 %v195_v21, 0.0  ;;  %v193_v25 = vadd.f32 %v235_v13, %v182_v22 }
  0xed   :  { %v252_v27 = vpack.c.bf16 %v199_v24, %v198_v23  ;;  %v197_v28 = vmax.f32 %v193_v25, 0.0 }
  0xef   :  { %254 = vst [vmem:[%s366_s4 + $0x8] sm:$0xff] %v252_v27   ;;  %v247_v29 = vpack.c.bf16 %v197_v28, %v196_v26 }
  0xf1   :  { %248 = vst [vmem:[%s366_s4] sm:$0xff] %v247_v29  }

// kernel: _resnet_forward.11
= control target key start
LH: loop header
LB: loop body
LE: loop exit
PB: predicated region body
PF: predicated region fallthrough
CT: control target
= control target key end

     0   :  { %s397_s1 = inlined_call_operand.vmem [shape: bf16[128,128], index: 1, kind: input, shape index: {}]   ;;  %s398_s0 = inlined_call_operand.vmem [shape: bf16[32,128], index: 0, kind: input, shape index: {}]   ;;  %s399_s2 = inlined_call_operand.vmem [shape: f32[1,128], index: 2, kind: input, shape index: {}]   ;;  %s400_s3 = inlined_call_operand.vmem [shape: f32[1,128], index: 3, kind: input, shape index: {}]   ;;  %s401_s4 = inlined_call_operand.vmem [shape: bf16[32,128], index: 4, kind: input, shape index: {}]   ;;  %s402_s5 = inlined_call_operand.vmem [shape: bf16[32,128], index: 5, kind: output, shape index: {}]  }
   0x1   :  { %v309_v0 = vld [vmem:[%s397_s1 + $0x38] sm:$0xff]   ;;  %v310_v1 = vld [vmem:[%s397_s1 + $0x30] sm:$0xff]   ;;  %v311_v2 = vld [vmem:[%s397_s1 + $0x28] sm:$0xff]  }
   0x2   :  { %289 = vmatprep.subr.bf16.mxu0 %v309_v0  ;;  %v312_v3 = vld [vmem:[%s397_s1 + $0x20] sm:$0xff]   ;;  %v313_v5 = vld [vmem:[%s397_s1 + $0x18] sm:$0xff]   ;;  %v314_v6 = vld [vmem:[%s397_s1 + $0x10] sm:$0xff]  }
   0x3   :  { %290 = vmatpush3.bf16.msra.mxu0 %v309_v0  ;;  %v317_v4 = vld [vmem:[%s398_s0] sm:$0xff]   ;;  %v315_v7 = vld [vmem:[%s397_s1 + $0x8] sm:$0xff]  }
   0x4   :  { %291 = vmatprep.subr.bf16.mxu0 %v310_v1  ;;  %305 = vmatprep.mubr.bf16.mxu0 %v317_v4  ;;  %v316_v8 = vld [vmem:[%s397_s1] sm:$0xff]   ;;  %v318_v9 = vld [vmem:[%s398_s0 + $0x8] sm:$0xff]  }
   0x5   :  { %v249_v10 = vld [vmem:[%s399_s2] ss:$0 sm:$0xff]  ;;  %v277_v13 = vld [vmem:[%s401_s4 + $0x8] sm:$0xff]  }
   0x6   :  { %v250_v12 = vld [vmem:[%s400_s3] ss:$0 sm:$0xff]  ;;  %v265_v18 = vunpack.c.l.bf16 %v277_v13  ;;  %v266_v24 = vunpack.c.h.bf16 %v277_v13 }
   0x7   :  { %292 = vmatpush3.bf16.msra.mxu0 %v310_v1  ;;  %v260_v16 = vld [vmem:[%s401_s4] sm:$0xff]  }
   0x8   :  { %293 = vmatprep.subr.bf16.mxu0 %v311_v2  ;;  %v261_v22 = vunpack.c.l.bf16 %v260_v16  ;;  %v262_v29 = vunpack.c.h.bf16 %v260_v16 }
   0xb   :  { %294 = vmatpush3.bf16.msra.mxu0 %v311_v2 }
   0xc   :  { %295 = vmatprep.subr.bf16.mxu0 %v312_v3 }
   0xf   :  { %296 = vmatpush3.bf16.msra.mxu0 %v312_v3 }
  0x10   :  { %297 = vmatprep.subr.bf16.mxu0 %v313_v5 }
  0x13   :  { %298 = vmatpush3.bf16.msra.mxu0 %v313_v5 }
  0x14   :  { %299 = vmatprep.subr.bf16.mxu0 %v314_v6 }
  0x17   :  { %300 = vmatpush3.bf16.msra.mxu0 %v314_v6 }
  0x18   :  { %301 = vmatprep.subr.bf16.mxu0 %v315_v7 }
  0x1b   :  { %302 = vmatpush3.bf16.msra.mxu0 %v315_v7 }
  0x1c   :  { %303 = vmatprep.subr.bf16.mxu0 %v316_v8 }
  0x1f   :  { %304 = vmatpush3.bf16.msra.mxu0 %v316_v8 }
  0x22   :  { %306 = vmatmul.mubr.bf16.vlgmr.msra.gmra.mxu0 %v318_v9 }
  0xe2   :  { %v307_v11 = vpop.f32.mrf.mxu0 }
  0xe3   :  { %v186_v14 = vmul.f32 %v307_v11, %v249_v10 }
  0xe4   :  { %v147_v15 = vpop.f32.mrf.mxu0 }
  0xe5   :  { %v197_v17 = vadd.f32 %v250_v12, %v186_v14  ;;  %v184_v19 = vmul.f32 %v249_v10, %v147_v15 }
  0xe6   :  { %v308_v20 = vpop.f32.mrf.mxu0 }
  0xe7   :  { %v195_v21 = vadd.f32 %v250_v12, %v184_v19  ;;  %v187_v23 = vmul.f32 %v308_v20, %v249_v10  ;;  %v209_v26 = vadd.f32 %v265_v18, %v197_v17 }
  0xe8   :  { %v150_v25 = vpop.f32.mrf.mxu0 }
  0xe9   :  { %v198_v27 = vadd.f32 %v250_v12, %v187_v23  ;;  %v185_v28 = vmul.f32 %v249_v10, %v150_v25  ;;  %v207_v30 = vadd.f32 %v261_v22, %v195_v21  ;;  %v213_v33 = vmax.f32 %v209_v26, 0.0 }
  0xeb   :  { %v210_v31 = vadd.f32 %v266_v24, %v198_v27  ;;  %v196_v32 = vadd.f32 %v250_v12, %v185_v28  ;;  %v211_v36 = vmax.f32 %v207_v30, 0.0 }
  0xed   :  { %v214_v34 = vmax.f32 %v210_v31, 0.0  ;;  %v208_v35 = vadd.f32 %v262_v29, %v196_v32 }
  0xef   :  { %v275_v37 = vpack.c.bf16 %v214_v34, %v213_v33  ;;  %v212_v38 = vmax.f32 %v208_v35, 0.0 }
  0xf1   :  { %278 = vst [vmem:[%s402_s5 + $0x8] sm:$0xff] %v275_v37   ;;  %v270_v39 = vpack.c.bf16 %v212_v38, %v211_v36 }
  0xf3   :  { %271 = vst [vmem:[%s402_s5] sm:$0xff] %v270_v39  }

// kernel: _resnet_forward.12
= control target key start
LH: loop header
LB: loop body
LE: loop exit
PB: predicated region body
PF: predicated region fallthrough
CT: control target
= control target key end

     0   :  { %v207_v0 = vmov 0.0   ;;  %vm208_vm0 = vmmov 0   ;;  %s270_s1 = inlined_call_operand.vmem [shape: bf16[128,128], index: 1, kind: input, shape index: {}]   ;;  %s271_s0 = inlined_call_operand.vmem [shape: bf16[8,128], index: 0, kind: input, shape index: {}]   ;;  %s272_s2 = inlined_call_operand.vmem [shape: f32[1,128], index: 2, kind: input, shape index: {}]   ;;  %s273_s3 = inlined_call_operand.vmem [shape: f32[1,128], index: 3, kind: input, shape index: {}]   ;;  %s274_s4 = inlined_call_operand.vmem [shape: bf16[8,128], index: 4, kind: output, shape index: {}]  }
   0x1   :  { %177 = vmatprep.subr.bf16.mxu0 %v207_v0  ;;  %v199_v1 = vld [vmem:[%s270_s1 + $0x38] sm:$0xff]   ;;  %193 = vmatprep.mubr.msk.bf16.mxu0 %vm208_vm0, %v207_v0  ;;  %v200_v2 = vld [vmem:[%s270_s1 + $0x30] sm:$0xff]   ;;  %v201_v3 = vld [vmem:[%s270_s1 + $0x28] sm:$0xff]  }
   0x2   :  { %178 = vmatpush3.bf16.msra.mxu0 %v199_v1  ;;  %v202_v4 = vld [vmem:[%s270_s1 + $0x20] sm:$0xff]   ;;  %v203_v5 = vld [vmem:[%s270_s1 + $0x18] sm:$0xff]   ;;  %v204_v6 = vld [vmem:[%s270_s1 + $0x10] sm:$0xff]  }
   0x3   :  { %179 = vmatprep.subr.bf16.mxu0 %v207_v0  ;;  %v205_v7 = vld [vmem:[%s270_s1 + $0x8] sm:$0xff]   ;;  %v206_v8 = vld [vmem:[%s270_s1] sm:$0xff]  }
   0x4   :  { %v24_v9 = vld [vmem:[%s271_s0] sm:$0xf] }
   0x5   :  { %v166_v10 = vld [vmem:[%s272_s2] ss:$0 sm:$0xff] }
   0x6   :  { %180 = vmatpush3.bf16.msra.mxu0 %v200_v2  ;;  %v167_v12 = vld [vmem:[%s273_s3] ss:$0 sm:$0xff] }
   0x7   :  { %181 = vmatprep.subr.bf16.mxu0 %v207_v0 }
   0xa   :  { %182 = vmatpush3.bf16.msra.mxu0 %v201_v3 }
   0xb   :  { %183 = vmatprep.subr.bf16.mxu0 %v207_v0 }
   0xe   :  { %184 = vmatpush3.bf16.msra.mxu0 %v202_v4 }
   0xf   :  { %185 = vmatprep.subr.bf16.mxu0 %v207_v0 }
  0x12   :  { %186 = vmatpush3.bf16.msra.mxu0 %v203_v5 }
  0x13   :  { %187 = vmatprep.subr.bf16.mxu0 %v207_v0 }
  0x16   :  { %188 = vmatpush3.bf16.msra.mxu0 %v204_v6 }
  0x17   :  { %189 = vmatprep.subr.bf16.mxu0 %v207_v0 }
  0x1a   :  { %190 = vmatpush3.bf16.msra.mxu0 %v205_v7 }
  0x1b   :  { %191 = vmatprep.subr.bf16.mxu0 %v207_v0 }
  0x1e   :  { %192 = vmatpush3.bf16.msra.mxu0 %v206_v8 }
  0x21   :  { %194 = vmatmul.mubr.bf16.vlgmr.msra.gmra.mxu0 %v24_v9 }
  0xe1   :  { %v123_v11 = vpop.f32.mrf.mxu0 }
  0xe2   :  { %v142_v13 = vmul.f32 %v166_v10, %v123_v11 }
  0xe3   :  { %v195_v14 = vpop.f32.mrf.mxu0 }
  0xe4   :  { %v150_v15 = vadd.f32 %v167_v12, %v142_v13 }
  0xe5   :  { %v126_v16 = vpop.f32.mrf.mxu0 }
  0xe6   :  { %v151_v17 = vmax.f32 %v150_v15, 0.0 }
  0xe7   :  { %v196_v18 = vpop.f32.mrf.mxu0 }
  0xe8   :  { %v152_v19 = vpack.c.bf16 %v151_v17, %v151_v17 }
  0xea   :  { %153 = vst [vmem:[%s274_s4] sm:$0xf] %v152_v19 }

// kernel: _resnet_forward.14
= control target key start
LH: loop header
LB: loop body
LE: loop exit
PB: predicated region body
PF: predicated region fallthrough
CT: control target
= control target key end

     0   :  { %s388_s1 = inlined_call_operand.vmem [shape: bf16[256,128], index: 1, kind: input, shape index: {}]   ;;  %s389_s0 = inlined_call_operand.vmem [shape: bf16[8,256], index: 0, kind: input, shape index: {}]   ;;  %s390_s2 = inlined_call_operand.vmem [shape: f32[1,128], index: 2, kind: input, shape index: {}]   ;;  %s391_s4 = inlined_call_operand.vmem [shape: bf16[8,128], index: 4, kind: input, shape index: {}]   ;;  %s392_s3 = inlined_call_operand.vmem [shape: f32[1,128], index: 3, kind: input, shape index: {}]   ;;  %s393_s5 = inlined_call_operand.vmem [shape: bf16[8,128], index: 5, kind: output, shape index: {}]  }
   0x1   :  { %v277_v0 = vld [vmem:[%s388_s1 + $0x78] sm:$0xff]   ;;  %v279_v2 = vld [vmem:[%s388_s1 + $0x70] sm:$0xff]   ;;  %v281_v4 = vld [vmem:[%s388_s1 + $0x68] sm:$0xff]  }
   0x2   :  { %v278_v1 = vld [vmem:[%s388_s1 + $0x38] sm:$0xff]   ;;  %255 = vmatprep.subr.bf16.mxu0 %v277_v0  ;;  %v280_v3 = vld [vmem:[%s388_s1 + $0x30] sm:$0xff]   ;;  %v282_v5 = vld [vmem:[%s388_s1 + $0x28] sm:$0xff]  }
   0x3   :  { %256 = vmatpush3.bf16.msra.mxu0 %v278_v1  ;;  %v283_v6 = vld [vmem:[%s388_s1 + $0x60] sm:$0xff]   ;;  %v285_v8 = vld [vmem:[%s388_s1 + $0x58] sm:$0xff]   ;;  %v287_v10 = vld [vmem:[%s388_s1 + $0x50] sm:$0xff]  }
   0x4   :  { %257 = vmatprep.subr.bf16.mxu0 %v279_v2  ;;  %v284_v7 = vld [vmem:[%s388_s1 + $0x20] sm:$0xff]   ;;  %v286_v9 = vld [vmem:[%s388_s1 + $0x18] sm:$0xff]   ;;  %v288_v13 = vld [vmem:[%s388_s1 + $0x10] sm:$0xff]  }
   0x5   :  { %v27_v11 = vld [vmem:[%s389_s0] sm:$0xff]  ;;  %v289_v14 = vld [vmem:[%s388_s1 + $0x48] sm:$0xff]  }
   0x6   :  { %v236_v12 = vcombine.high %v27_v11, %v27_v11  ;;  %v290_v15 = vld [vmem:[%s388_s1 + $0x8] sm:$0xff]   ;;  %v291_v16 = vld [vmem:[%s388_s1 + $0x40] sm:$0xff]   ;;  %v235_v18 = vcombine.low %v27_v11, %v27_v11 }
   0x7   :  { %258 = vmatpush3.bf16.msra.mxu0 %v280_v3  ;;  %v292_v17 = vld [vmem:[%s388_s1] sm:$0xff]  }
   0x8   :  { %259 = vmatprep.subr.bf16.mxu0 %v281_v4  ;;  %195 = vmatprep.mubr.bf16.mxu0 %v236_v12  ;;  %v253_v21 = vld [vmem:[%s390_s2] ss:$0 sm:$0xff] }
   0x9   :  { %v225_v22 = vld [vmem:[%s391_s4] sm:$0xf] }
   0xa   :  { %v254_v24 = vld [vmem:[%s392_s3] ss:$0 sm:$0xff]  ;;  %v226_v27 = vunpack.c.l.bf16 %v225_v22 }
   0xb   :  { %260 = vmatpush3.bf16.msra.mxu0 %v282_v5 }
   0xc   :  { %261 = vmatprep.subr.bf16.mxu0 %v283_v6 }
   0xf   :  { %262 = vmatpush3.bf16.msra.mxu0 %v284_v7 }
  0x10   :  { %263 = vmatprep.subr.bf16.mxu0 %v285_v8 }
  0x13   :  { %264 = vmatpush3.bf16.msra.mxu0 %v286_v9 }
  0x14   :  { %265 = vmatprep.subr.bf16.mxu0 %v287_v10 }
  0x17   :  { %266 = vmatpush3.bf16.msra.mxu0 %v288_v13 }
  0x18   :  { %267 = vmatprep.subr.bf16.mxu0 %v289_v14 }
  0x1b   :  { %268 = vmatpush3.bf16.msra.mxu0 %v290_v15 }
  0x1c   :  { %269 = vmatprep.subr.bf16.mxu0 %v291_v16 }
  0x1f   :  { %270 = vmatpush3.bf16.msra.mxu0 %v292_v17 }
  0x22   :  { %196 = vmatmul.mubr.bf16.vlgmr.msra.gmra.mxu0 %v235_v18 }
  0xe2   :  { %v271_v19 = vpop.f32.mrf.mxu0 }
  0xe4   :  { %v272_v20 = vpop.f32.mrf.mxu0 }
  0xe5   :  { %v273_v23 = vadd.f32 %v272_v20, %v271_v19 }
  0xe6   :  { %v274_v25 = vpop.f32.mrf.mxu0 }
  0xe7   :  { %v216_v26 = vmul.f32 %v273_v23, %v253_v21 }
  0xe8   :  { %v275_v28 = vpop.f32.mrf.mxu0 }
  0xe9   :  { %v224_v29 = vadd.f32 %v254_v24, %v216_v26 }
  0xeb   :  { %v227_v30 = vadd.f32 %v226_v27, %v224_v29 }
  0xed   :  { %v228_v31 = vmax.f32 %v227_v30, 0.0 }
  0xef   :  { %v229_v32 = vpack.c.bf16 %v228_v31, %v228_v31 }
  0xf1   :  { %230 = vst [vmem:[%s393_s5] sm:$0xf] %v229_v32 }

// kernel: _resnet_forward.13
= control target key start
LH: loop header
LB: loop body
LE: loop exit
PB: predicated region body
PF: predicated region fallthrough
CT: control target
= control target key end

     0   :  { %v206_v0 = vmov 0.0   ;;  %vm207_vm0 = vmmov 0   ;;  %s269_s1 = inlined_call_operand.vmem [shape: bf16[128,128], index: 1, kind: input, shape index: {}]   ;;  %s270_s0 = inlined_call_operand.vmem [shape: bf16[8,128], index: 0, kind: input, shape index: {}]   ;;  %s271_s2 = inlined_call_operand.vmem [shape: f32[1,128], index: 2, kind: input, shape index: {}]   ;;  %s272_s3 = inlined_call_operand.vmem [shape: f32[1,128], index: 3, kind: input, shape index: {}]   ;;  %s273_s4 = inlined_call_operand.vmem [shape: bf16[8,128], index: 4, kind: output, shape index: {}]  }
   0x1   :  { %176 = vmatprep.subr.bf16.mxu0 %v206_v0  ;;  %v198_v1 = vld [vmem:[%s269_s1 + $0x38] sm:$0xff]   ;;  %192 = vmatprep.mubr.msk.bf16.mxu0 %vm207_vm0, %v206_v0  ;;  %v199_v2 = vld [vmem:[%s269_s1 + $0x30] sm:$0xff]   ;;  %v200_v3 = vld [vmem:[%s269_s1 + $0x28] sm:$0xff]  }
   0x2   :  { %177 = vmatpush3.bf16.msra.mxu0 %v198_v1  ;;  %v201_v4 = vld [vmem:[%s269_s1 + $0x20] sm:$0xff]   ;;  %v202_v5 = vld [vmem:[%s269_s1 + $0x18] sm:$0xff]   ;;  %v203_v6 = vld [vmem:[%s269_s1 + $0x10] sm:$0xff]  }
   0x3   :  { %178 = vmatprep.subr.bf16.mxu0 %v206_v0  ;;  %v204_v7 = vld [vmem:[%s269_s1 + $0x8] sm:$0xff]   ;;  %v205_v8 = vld [vmem:[%s269_s1] sm:$0xff]  }
   0x4   :  { %v24_v9 = vld [vmem:[%s270_s0] sm:$0xf] }
   0x5   :  { %v165_v10 = vld [vmem:[%s271_s2] ss:$0 sm:$0xff] }
   0x6   :  { %179 = vmatpush3.bf16.msra.mxu0 %v199_v2  ;;  %v166_v12 = vld [vmem:[%s272_s3] ss:$0 sm:$0xff] }
   0x7   :  { %180 = vmatprep.subr.bf16.mxu0 %v206_v0 }
   0xa   :  { %181 = vmatpush3.bf16.msra.mxu0 %v200_v3 }
   0xb   :  { %182 = vmatprep.subr.bf16.mxu0 %v206_v0 }
   0xe   :  { %183 = vmatpush3.bf16.msra.mxu0 %v201_v4 }
   0xf   :  { %184 = vmatprep.subr.bf16.mxu0 %v206_v0 }
  0x12   :  { %185 = vmatpush3.bf16.msra.mxu0 %v202_v5 }
  0x13   :  { %186 = vmatprep.subr.bf16.mxu0 %v206_v0 }
  0x16   :  { %187 = vmatpush3.bf16.msra.mxu0 %v203_v6 }
  0x17   :  { %188 = vmatprep.subr.bf16.mxu0 %v206_v0 }
  0x1a   :  { %189 = vmatpush3.bf16.msra.mxu0 %v204_v7 }
  0x1b   :  { %190 = vmatprep.subr.bf16.mxu0 %v206_v0 }
  0x1e   :  { %191 = vmatpush3.bf16.msra.mxu0 %v205_v8 }
  0x21   :  { %193 = vmatmul.mubr.bf16.vlgmr.msra.gmra.mxu0 %v24_v9 }
  0xe1   :  { %v123_v11 = vpop.f32.mrf.mxu0 }
  0xe2   :  { %v142_v13 = vmul.f32 %v165_v10, %v123_v11 }
  0xe3   :  { %v194_v14 = vpop.f32.mrf.mxu0 }
  0xe4   :  { %v150_v15 = vadd.f32 %v166_v12, %v142_v13 }
  0xe5   :  { %v126_v16 = vpop.f32.mrf.mxu0 }
  0xe6   :  { %v151_v17 = vpack.c.bf16 %v150_v15, %v150_v15 }
  0xe7   :  { %v195_v18 = vpop.f32.mrf.mxu0 }
  0xe8   :  { %152 = vst [vmem:[%s273_s4] sm:$0xf] %v151_v17 }

// kernel: _resnet_forward.15
= control target key start
LH: loop header
LB: loop body
LE: loop exit
PB: predicated region body
PF: predicated region fallthrough
CT: control target
= control target key end

     0   :  { %10 = vsyncpa [#allocation3], 0  ;;  %s810_s0 = inlined_call_operand.vmem [shape: bf16[2,8,128], index: 0, kind: input, shape index: {}]   ;;  %s811_s1 = inlined_call_operand.vmem [shape: f32[128,128], index: 1, kind: input, shape index: {}]   ;;  %s812_s2 = inlined_call_operand.vmem [shape: f32[1,128], index: 2, kind: input, shape index: {}]   ;;  %s813_s3 = inlined_call_operand.hbm [shape: f32[2,1,128], index: 3, kind: output, shape index: {0}]   ;;  %s814_s4 = inlined_call_operand.hbm [shape: f32[2,1,128], index: 4, kind: output, shape index: {1}]  }
   0x1   :  { %12 = vsyncpa [#allocation3 + $0x1], 0 }
   0x2   :  { %13 = vsyncpa [#allocation5], 0 }
   0x3   :  { %15 = vsyncpa [#allocation5 + $0x1], 0  ;;  %s641_s15 = smov 0   ;;  %s643_s16 = smov 0  }
   0x4   :  { %s645_s17 = smov 0   ;;  %s647_s18 = smov 0  }
   0x5 LB: > { %s662_s19 = sadd.s32 4294967295, %s610_s18   ;;  %s413_s20 = sadd.s32 4294967294, %s610_s18   ;;  %s610_s18 = sphi %s647_s18, %s820_s18   ;;  %s606_s17 = sphi %s645_s17, %s819_s17   ;;  %s602_s16 = sphi %s643_s16, %s818_s16   ;;  %s598_s15 = sphi %s641_s15, %s817_s15  }
   0x6   : > { %s666_s21 = sadd.s32 1, %s610_s18   ;;  %s96_s22 = sadd.s32 1, %s606_s17 }
   0x7   : > { %s93_s23 = ssub.s32 %s610_s18, %s666_s21  ;;  %p106_p0 = scmp.ne.s32.totalorder %s606_s17, %s602_s16 }
   0x8   : > { %p94_p1 = scmp.eq.s32.totalorder %s93_s23, 0  ;;  %p107_p2 = scmp.eq.s32.totalorder %s662_s19, 1 }
   0x9   : > { %p112_p3 = scmp.ne.s32.totalorder %s602_s16, %s598_s15  ;;  %p113_p4 = scmp.eq.s32.totalorder %s413_s20, 1 }
   0xa   : > { %s677_s24 = scalar_select %p94_p1, %s606_s17, %s96_s22  }
   0xb   : > { %p679_p5 = por %p107_p2, %p106_p0  ;;  %p683_p6 = por %p113_p4, %p112_p3 }
   0xc   : > { %p416_p7 = scmp.ge.s32.totalorder %s610_s18, 1  ;;  %p170_p8 = scmp.lt.s32.totalorder %s610_s18, 3 }
   0xe   : > { %p171_p9 = pnand %p416_p7, %p170_p8 }
   0xf   : > { %p198_p10 = scmp.lt.s32.totalorder (!%p171_p9), %s662_s19, 1  ;;  %s743_s30 = sand.u32 (!%p171_p9), 1, %s602_s16  }
  0x10   : > { %174 = sbr.rel (%p171_p9) target bundleno = 262 (0x106), region = 32  ;;  %s418_s6 = sshll.u32 (!%p171_p9), %s662_s19, 4 }
  0x11   : > { %s315_s10 = scalar_lea.hbm (!%p171_p9), %s813_s3, %s418_s6  ;;  %s301_s11 = scalar_lea.sflag (!%p171_p9), [#allocation3], %s743_s30 }
  0x15   : > { %v227_v0 = vld [vmem:[%s811_s1 + $0x78] sm:$0xff]  ;;  %v612_v1 = vmov 0.0   ;;  %v226_v2 = vld [vmem:[%s811_s1 + $0x70] sm:$0xff]  ;;  %vm613_vm0 = vmmov 0   ;;  %s199_s5 = scalar_select %p198_p10, %s662_s19, 1  ;;  %v225_v3 = vld [vmem:[%s811_s1 + $0x68] sm:$0xff] }
  0x16   : > { %439 = vmatprep.subr.mxu0 %v612_v1  ;;  %471 = vmatprep.mubr.msk.f32.mxu0 %vm613_vm0, %v612_v1  ;;  %v224_v4 = vld [vmem:[%s811_s1 + $0x60] sm:$0xff]  ;;  %v223_v6 = vld [vmem:[%s811_s1 + $0x58] sm:$0xff]  ;;  %v222_v8 = vld [vmem:[%s811_s1 + $0x50] sm:$0xff] }
  0x17   : > { %440 = vmatpush3.msra.mxu0 %v227_v0  ;;  %s417_s8 = sshll.u32 %s199_s5, 2  ;;  %v221_v10 = vld [vmem:[%s811_s1 + $0x48] sm:$0xff]  ;;  %v220_v12 = vld [vmem:[%s811_s1 + $0x40] sm:$0xff]  ;;  %v219_v14 = vld [vmem:[%s811_s1 + $0x38] sm:$0xff]  ;;  %s191_s5 = scalar_lea.vmem [#allocation2], %s743_s30 }
  0x18   : > { %441 = vmatprep.subr.mxu0 %v612_v1  ;;  %s201_s13 = scalar_lea.vmem %s810_s0, %s417_s8  ;;  %v218_v15 = vld [vmem:[%s811_s1 + $0x30] sm:$0xff]  ;;  %v217_v17 = vld [vmem:[%s811_s1 + $0x28] sm:$0xff]  ;;  %v216_v18 = vld [vmem:[%s811_s1 + $0x20] sm:$0xff]  ;;  %s317_s7 = sshll.u32 %s191_s5, 4  ;;  %s318_s7 = int_to_ptr.vmem [resolvable:$true] %s317_s7 }
  0x19   : > { %442 = vmatpush3.msra.mxu0 %v226_v2  ;;  %v202_v5 = vld [vmem:[%s201_s13] sm:$0xf]  ;;  %v215_v20 = vld [vmem:[%s811_s1 + $0x18] sm:$0xff]  ;;  %v214_v21 = vld [vmem:[%s811_s1 + $0x10] sm:$0xff]  ;;  %s520_s12 = scalar_lea.vmem %s318_s7, 16  ;;  %s614_s13 = smov [#allocation2]  }
  0x1a   : > { %443 = vmatprep.subr.mxu0 %v612_v1  ;;  %v203_v7 = vunpack.c.l.bf16 %v202_v5  ;;  %v213_v23 = vld [vmem:[%s811_s1 + $0x8] sm:$0xff]  ;;  %v212_v24 = vld [vmem:[%s811_s1] sm:$0xff]  ;;  %p521_p11 = scmp.ne.s32.totalorder %s318_s7, %s520_s12  ;;  %s524_s14 = sshll.u32 %s614_s13, 4  ;;  %s525_s14 = int_to_ptr.vmem [resolvable:$false] %s524_s14 }
  0x1b   : > { %444 = vmatpush3.msra.mxu0 %v225_v3  ;;  %s526_s20 = scalar_lea.vmem %s525_s14, 32  ;;  %p527_p0 = scmp.lt.s32.totalorder %s318_s7, %s525_s14 }
  0x1c   : > { %445 = vmatprep.subr.mxu0 %v612_v1  ;;  %v204_v9 = vrot.slane %v203_v7, 4  ;;  %p522_p12 = pnand %p521_p11, %p679_p5  ;;  %p528_p1 = scmp.lt.s32.totalorder %s526_s20, %s520_s12 }
  0x1d   : > { %446 = vmatpush3.msra.mxu0 %v224_v4 }
  0x1e   : > { %447 = vmatprep.subr.mxu0 %v612_v1  ;;  %v205_v11 = vadd.f32 %v204_v9, %v203_v7  ;;  %p523_p13 = pneg %p522_p12  ;;  %p529_p2 = por %p528_p1, %p527_p0 }
  0x1f   : > { %448 = vmatpush3.msra.mxu0 %v223_v6 }
  0x20   : > { %449 = vmatprep.subr.mxu0 %v612_v1  ;;  %v206_v13 = vrot.slane %v205_v11, 2  ;;  %p530_p3 = pnand %p529_p2, %p523_p13 }
  0x21   : > { %450 = vmatpush3.msra.mxu0 %v222_v8 }
  0x22   : > { %451 = vmatprep.subr.mxu0 %v612_v1  ;;  %v207_v16 = vadd.f32 %v206_v13, %v205_v11 }
  0x23   : > { %452 = vmatpush3.msra.mxu0 %v221_v10 }
  0x24   : > { %453 = vmatprep.subr.mxu0 %v612_v1  ;;  %v208_v19 = vrot.slane %v207_v16, 1 }
  0x25   : > { %454 = vmatpush3.msra.mxu0 %v220_v12 }
  0x26   : > { %455 = vmatprep.subr.mxu0 %v612_v1  ;;  %v209_v22 = vadd.f32 %v208_v19, %v207_v16 }
  0x27   : > { %456 = vmatpush3.msra.mxu0 %v219_v14 }
  0x28   : > { %457 = vmatprep.subr.mxu0 %v612_v1  ;;  %v210_v25 = vmul.f32 0.25, %v209_v22 }
  0x29   : > { %458 = vmatpush3.msra.mxu0 %v218_v15 }
  0x2a   : > { %459 = vmatprep.subr.mxu0 %v612_v1  ;;  %211 = vst [vmem:[%s191_s5] sm:$0x1] %v210_v25 }
  0x2b   : > { %460 = vmatpush3.msra.mxu0 %v217_v17 }
  0x2c   : > { %461 = vmatprep.subr.mxu0 %v612_v1 }
  0x2d   : > { %462 = vmatpush3.msra.mxu0 %v216_v18 }
  0x2e   : > { %463 = vmatprep.subr.mxu0 %v612_v1 }
  0x2f   : > { %464 = vmatpush3.msra.mxu0 %v215_v20 }
  0x30   : > { %465 = vmatprep.subr.mxu0 %v612_v1 }
  0x31   : > { %466 = vmatpush3.msra.mxu0 %v214_v21 }
  0x32   : > { %467 = vmatprep.subr.mxu0 %v612_v1 }
  0x33   : > { %468 = vmatpush3.msra.mxu0 %v213_v23 }
  0x34   : > { %469 = vmatprep.subr.mxu0 %v612_v1 }
  0x35   : > { %470 = vmatpush3.msra.mxu0 %v212_v24 }
  0x36   : > { %472 = vmatmul.mubr.f32.vlgmr.msra.gmra.mxu0 %v210_v25 }
  0x37   : > { %533 = shalt.err (!%p530_p3)
}
  0x38   : > { %s534_s22 = scalar_lea.hbm %s315_s10, 16  ;;  %s538_s28 = scalar_lea.hbm %s813_s3, 32 }
  0x39   : > { %p535_p4 = scmp.ne.s32.totalorder %s315_s10, %s534_s22  ;;  %p539_p9 = scmp.lt.s32.totalorder %s315_s10, %s813_s3 }
  0x3a   : > { %p540_p10 = scmp.lt.s32.totalorder %s538_s28, %s534_s22 }
  0x3b   : > { %p536_p7 = pnand %p535_p4, %p679_p5 }
  0x3c   : > { %p541_p11 = por %p540_p10, %p539_p9 }
  0x3d   : > { %p537_p8 = pneg %p536_p7 }
  0x3f   : > { %p542_p12 = pnand %p541_p11, %p537_p8 }
  0x41   : > { %545 = shalt.err (!%p542_p12)
}
  0x42   : > { %474 = dma.vmem_to_hbm [thread:$0]  (%p679_p5), %s318_s7, 16, %s315_s10, %s301_s11   ;;  %v228_v26 = vld [vmem:[%s812_s2] sm:$0x1] }
  0x43   : > { %s197_s12 = scalar_lea.vmem [#allocation4], %s743_s30  ;;  %s774_s22 = scalar_lea.hbm %s814_s4, %s418_s6 }
  0x44   : > { %s330_s13 = sshll.u32 %s197_s12, 4  ;;  %s305_s23 = scalar_lea.sflag [#allocation5], %s743_s30  ;;  %s331_s13 = int_to_ptr.vmem [resolvable:$true] %s330_s13 }
  0x45   : > { %s546_s27 = scalar_lea.vmem %s331_s13, 16  ;;  %s615_s7 = smov [#allocation4]  }
  0x46   : > { %p547_p13 = scmp.ne.s32.totalorder %s331_s13, %s546_s27  ;;  %s550_s10 = sshll.u32 %s615_s7, 4  ;;  %s551_s10 = int_to_ptr.vmem [resolvable:$false] %s550_s10 }
  0x47   : > { %s552_s11 = scalar_lea.vmem %s551_s10, 32  ;;  %p553_p2 = scmp.lt.s32.totalorder %s331_s13, %s551_s10 }
  0x48   : > { %p548_p0 = pnand %p547_p13, %p679_p5  ;;  %p554_p3 = scmp.lt.s32.totalorder %s552_s11, %s546_s27 }
  0x4a   : > { %p549_p1 = pneg %p548_p0  ;;  %p555_p4 = por %p554_p3, %p553_p2 }
  0x4c   : > { %p556_p7 = pnand %p555_p4, %p549_p1 }
  0xf6   : > { %v295_v27 = vpop.f32.mrf.mxu0 }
  0xf7   : > { %v296_v28 = vadd.f32 %v295_v27, %v228_v26 }
  0xf8   : > { %v473_v29 = vpop.f32.mrf.mxu0 }
  0xf9   : > { %299 = vst [vmem:[%s197_s12] sm:$0x1] %v296_v28 }
  0xfa   : > { %559 = shalt.err (!%p556_p7)
}
  0xfb   : > { %s560_s19 = scalar_lea.hbm %s774_s22, 16  ;;  %s564_s28 = scalar_lea.hbm %s814_s4, 32 }
  0xfc   : > { %p561_p8 = scmp.ne.s32.totalorder %s774_s22, %s560_s19  ;;  %p565_p11 = scmp.lt.s32.totalorder %s774_s22, %s814_s4 }
  0xfd   : > { %p566_p12 = scmp.lt.s32.totalorder %s564_s28, %s560_s19 }
  0xfe   : > { %p562_p9 = pnand %p561_p8, %p679_p5 }
  0xff   : > { %p567_p13 = por %p566_p12, %p565_p11 }
 0x100   : > { %p563_p10 = pneg %p562_p9 }
 0x102   : > { %p568_p0 = pnand %p567_p13, %p563_p10 }
 0x104   : > { %571 = shalt.err (!%p568_p0)
}
 0x105   : > { %475 = dma.vmem_to_hbm [thread:$0]  (%p679_p5), %s331_s13, 16, %s774_s22, %s305_s23  }
 0x106 PF: > { %p485_p1 = scmp.ge.s32.totalorder %s610_s18, 2  ;;  %s342_s8 = sand.u32 1, %s598_s15  }
 0x107   : > { %s343_s9 = scalar_lea.sflag [#allocation3], %s342_s8 }
 0x108   : > { %p479_p2 = pnand %p485_p1, %p683_p6 }
 0x10a   : > { %p480_p3 = pneg %p479_p2 }
 0x10c   : > { %589 = dma.done.wait (%p480_p3), %s343_s9, 16  }
 0x10d   : > { %591 = vsyncadd (%p480_p3), %s343_s9, 4294967280  ;;  %s351_s12 = scalar_lea.sflag [#allocation5], %s342_s8 }
 0x10e   : > { %593 = dma.done.wait (%p480_p3), %s351_s12, 16  }
 0x10f   : > { %595 = vsyncadd (%p480_p3), %s351_s12, 4294967280  ;;  %p18_p5 = scmp.ge.s32.totalorder %s666_s21, 4   ;;  %s817_s15 = smov %s602_s16 }
 0x110   : > { %s818_s16 = smov %s606_s17  ;;  %s819_s17 = smov %s677_s24 }
 0x111   : > { %s820_s18 = smov %s666_s21  ;;  %20 = sbr.rel (!%p18_p5) target bundleno = 5 (0x5), region = 84 }
 0x116   :  { %355 = vsyncpa [#allocation3], 1 }
 0x117   :  { %357 = vsyncpa [#allocation3 + $0x1], 1 }
 0x118   :  { %358 = vsyncpa [#allocation5], 1 }
 0x119   :  { %360 = vsyncpa [#allocation5 + $0x1], 1 }

</bundles_post_ra>
